<compile_context>
chip_gen: v5e
topology: v5e:2x2
jax: 0.10.0
libtpu: 0.0.40
codegen_flags: <defaults>
</compile_context>

<pallas_src>
import jax
import jax.numpy as jnp
from jax.experimental import pallas as pl
from jax.experimental.pallas import tpu as pltpu

EPS = 1e-5
DEFAULT_VMEM_LIMIT = 48 * 1024 * 1024   # safe on v7x (64 MiB physical)


def _round_up(x, m):
    return ((x + m - 1) // m) * m


def pick_vmem_limit(default=DEFAULT_VMEM_LIMIT):
    """Generation-aware vmem limit: ~3/4 of physical VMEM, >= 48 MiB."""
    try:
        info = pltpu.get_tpu_info()
        phys = getattr(info, "vmem_capacity_bytes", None)
        if phys:
            return max(default, int(phys) * 3 // 4)   # 96 MiB on v5e/v6e, 48 MiB on v7x
    except Exception:
        pass
    return default


# --------------------------------------------------------------------------
# Pallas kernel: (1x1 conv + folded BN + ReLU) x n_layers -> max/mean over k
#                -> ResMLPBlock1D (two folded 1x1 convs, LeakyReLU residual)
# --------------------------------------------------------------------------
def make_patch_kernel(n_layers, tp, k, split_outputs):
    inv_k = 1.0 / k   # compile-time constant; mean = sum * (1/k)

    def kernel(*refs):
        g_ref = refs[0]                                     # (tp*k, CIN) bf16
        layer_refs = refs[1:1 + 2 * n_layers]               # (A_i bf16, c_i f32)
        R1_ref, r1_ref, R2_ref, r2_ref = refs[1 + 2 * n_layers:5 + 2 * n_layers]

        # All conv+BN+ReLU layers on the MXU: bf16 x bf16 -> f32 accumulate.
        # (Layer 0's tiny contraction still belongs here: it sits on the serial
        #  critical path and the MXU is otherwise idle at that point.)
        h = g_ref[...]
        for li in range(n_layers):
            A = layer_refs[2 * li][...]                     # (Cin, Cout) bf16
            c = layer_refs[2 * li + 1][...]                 # (1, Cout) f32
            h = jnp.dot(h.astype(A.dtype), A,
                        preferred_element_type=jnp.float32) + c
            h = jnp.maximum(h, 0.0)

        d = h.shape[-1]
        h3 = h.reshape(tp, k, d)                            # layout-free: k % 8 == 0
        m = jnp.max(h3, axis=1)                             # torch.max(groups, 2)[0]
        a = jnp.sum(h3, axis=1) * inv_k                     # torch.mean(groups, 2)

        # ResMLPBlock1D on max-pooled features (BN folded, LeakyReLU slope 0.2)
        u = jnp.dot(m.astype(R1_ref.dtype), R1_ref[...],
                    preferred_element_type=jnp.float32) + r1_ref[...]
        u = jnp.where(u > 0, u, 0.2 * u)
        v = jnp.dot(u.astype(R2_ref.dtype), R2_ref[...],
                    preferred_element_type=jnp.float32) + r2_ref[...]
        w = v + m
        w = jnp.where(w > 0, w, 0.2 * w)

        if split_outputs:                                   # D >= 128: two lane-dense outputs
            max_ref, avg_ref = refs[-2], refs[-1]
            max_ref[...] = w.astype(max_ref.dtype)
            avg_ref[...] = a.astype(avg_ref.dtype)
        else:                                               # D < 128: pack [max | avg]
            out_ref = refs[-1]
            out_ref[...] = jnp.concatenate([w, a], axis=-1).astype(out_ref.dtype)

    return kernel


def choose_tp(P, K, CIN, folded, vmem_limit_bytes, split_outputs,
              row_target=8192, min_grid_steps=4):
    """Patch-tile selection with padded-footprint VMEM accounting.

    * rows per step >= row_target (~10x the ~0.35us per-grid-step overhead)
      when the problem is big enough; largest qualifying tile wins.
    * prefer an even grid with >= min_grid_steps steps so both v7x TensorCores
      get balanced shards that still double-buffer (free on v5e/v6e).
    * footprint counts 128-lane / sublane-tile padding, ~2 live f32
      intermediates of the widest channel, and single-buffered weight slabs.
    """
    D = folded["layers"][-1][0].shape[1]
    max_c = max([A.shape[1] for A, _ in folded["layers"]] + [D])

    # single-buffered (Buffered(1)) weight/bias slabs, padded
    wbytes = 0
    for A, c in folded["layers"]:
        wbytes += _round_up(A.shape[0], 16) * _round_up(A.shape[1], 128) * 2
        wbytes += 8 * _round_up(c.shape[1], 128) * 4
    R1, r1, R2, r2 = folded["res"]
    for A in (R1, R2):
        wbytes += _round_up(A.shape[0], 16) * _round_up(A.shape[1], 128) * 2
    for c in (r1, r2):
        wbytes += 8 * _round_up(c.shape[1], 128) * 4

    def tile_bytes(tp):
        rows = tp * K
        # bf16 input tile (lane-padded to 128, sublane-padded to 16), double-buffered
        inp = 2 * _round_up(rows, 16) * _round_up(CIN, 128) * 2
        # ~2 live f32 intermediates at the widest channel width
        interm = 2 * _round_up(rows, 8) * _round_up(max_c, 128) * 4
        # f32 output tile(s), double-buffered
        if split_outputs:
            out = 2 * 2 * _round_up(tp, 8) * _round_up(D, 128) * 4
        else:
            out = 2 * _round_up(tp, 8) * _round_up(2 * D, 128) * 4
        return inp + interm + out + wbytes

    budget = int(0.70 * vmem_limit_bytes)
    divisors = [d for d in range(1, P + 1)
                if P % d == 0 and (d * K) % 16 == 0]        # bf16 row-tile alignment
    fits = [d for d in divisors if tile_bytes(d) <= budget]
    if not fits:
        return divisors[0] if divisors else 1

    ok_any = [d for d in fits if P // d >= min_grid_steps]
    ok_even = [d for d in ok_any if (P // d) % 2 == 0]      # balanced v7x megacore split

    good = ([d for d in ok_even if d * K >= row_target]
            or [d for d in ok_any if d * K >= row_target])
    if good:
        return max(good)
    if ok_even:
        return max(ok_even)
    if ok_any:
        return max(ok_any)
    return max(fits)


def patch_abstraction_pallas(groups, folded, tp=None):
    """groups: [P, K, CIN] float.  Returns (max_patches [P,D], avg_patches [P,D])."""
    P, K, CIN = groups.shape
    n_layers = len(folded["layers"])
    D = folded["layers"][-1][0].shape[1]
    split_outputs = D >= 128
    vmem_limit = pick_vmem_limit()

    if tp is None:
        tp = choose_tp(P, K, CIN, folded, vmem_limit, split_outputs)
    assert P % tp == 0, "patch tile must divide number of patches"
    assert K % 8 == 0, (
        "patch_size must be a multiple of 8 (f32 sublane tile); pad k to avoid "
        "hidden Mosaic relayout copies")
    assert (tp * K) % 16 == 0, "tp*k must be a multiple of 16 (bf16 row tile)"

    # Matmul-ready 2-D layout; bf16 halves the dominant HBM->VMEM DMA traffic.
    # TODO(synk): for 2C < 64 the lane dim of this tile is 128-padded in VMEM;
    # folding k into the lane dim would improve DMA efficiency but needs an
    # in-kernel relayout — the padding is accounted for in choose_tp instead.
    groups2d = groups.reshape(P * K, CIN).astype(jnp.bfloat16)

    # Advisory cost estimate for XLA's scheduler around the custom call.
    flops = 0
    for A, _ in folded["layers"]:
        flops += 2 * P * K * A.shape[0] * A.shape[1]
    flops += 2 * 2 * P * D * D                               # ResMLP matmuls
    wbytes = sum(int(A.size) * 2 + int(c.size) * 4 for A, c in folded["layers"])
    wbytes += sum(int(a.size) * (2 if a.ndim == 2 and a.shape[0] > 1 else 4)
                  for a in folded["res"])
    bytes_accessed = P * K * CIN * 2 + wbytes + P * 2 * D * 4
    cost = pl.CostEstimate(flops=flops, transcendentals=0,
                           bytes_accessed=bytes_accessed)

    kernel = make_patch_kernel(n_layers, tp, K, split_outputs)

    def launch(single_buffer_weights):
        def wspec(shape):
            # Constant-index weights/biases: fetch once, single-buffer them so
            # they don't double their VMEM footprint.
            if single_buffer_weights:
                return pl.BlockSpec(shape, lambda i: (0, 0),
                                    pipeline_mode=pl.Buffered(1))
            return pl.BlockSpec(shape, lambda i: (0, 0))

        in_arrays = [groups2d]
        in_specs = [pl.BlockSpec((tp * K, CIN), lambda i: (i, 0))]
        for A, c in folded["layers"]:
            in_arrays += [A, c]
            in_specs += [wspec(A.shape), wspec(c.shape)]
        for arr in folded["res"]:
            in_arrays.append(arr)
            in_specs.append(wspec(arr.shape))

        if split_outputs:
            out_specs = (pl.BlockSpec((tp, D), lambda i: (i, 0)),
                         pl.BlockSpec((tp, D), lambda i: (i, 0)))
            out_shape = (jax.ShapeDtypeStruct((P, D), jnp.float32),
                         jax.ShapeDtypeStruct((P, D), jnp.float32))
        else:
            out_specs = pl.BlockSpec((tp, 2 * D), lambda i: (i, 0))
            out_shape = jax.ShapeDtypeStruct((P, 2 * D), jnp.float32)

        out = pl.pallas_call(
            kernel,
            grid=(P // tp,),
            in_specs=in_specs,
            out_specs=out_specs,
            out_shape=out_shape,
            compiler_params=pltpu.CompilerParams(
                dimension_semantics=("parallel",),
                vmem_limit_bytes=vmem_limit),
            cost_estimate=cost,
        )(*in_arrays)
        return jax.block_until_ready(out)

    try:
        out = launch(True)
    except Exception:
        # Fallback if this jax build rejects pipeline_mode=pl.Buffered(1).
        out = launch(False)

    if split_outputs:
        max_p, avg_p = out
    else:
        max_p, avg_p = out[:, :D], out[:, D:]
    return max_p, avg_p


# --------------------------------------------------------------------------
# Plain-JAX glue: FPS, knn (argsort), gather, grouping (data-dependent
# indexing / sort — kept outside the kernel).
# --------------------------------------------------------------------------
def farthest_point_sample(xyz, npoint):
    B, N, _ = xyz.shape

    def body(i, state):
        dist, farthest, idxs = state
        idxs = idxs.at[:, i].set(farthest)
        centroid = jnp.take_along_axis(xyz, farthest[:, None, None], axis=1)
        d = jnp.sum((xyz - centroid) ** 2, axis=-1)
        dist = jnp.minimum(dist, d)
        farthest = jnp.argmax(dist, axis=-1).astype(jnp.int32)
        return dist, farthest, idxs

    state = (jnp.full((B, N), 1e10, xyz.dtype),
             jnp.zeros((B,), jnp.int32),
             jnp.zeros((B, npoint), jnp.int32))
    _, _, idxs = jax.lax.fori_loop(0, npoint, body, state)
    return idxs


def square_distance(src, dst):
    return jnp.sum((src[:, :, None, :] - dst[:, None, :, :]) ** 2, axis=-1)


def index_points(points, idx):
    B = idx.shape[0]
    raw = idx.shape
    flat = idx.reshape(B, -1)
    out = jnp.take_along_axis(points, flat[..., None], axis=1)
    return out.reshape(*raw, points.shape[-1])


def build_groups(xyz, feature, num_patches, patch_size):
    B, N, C = feature.shape
    fps_idx = farthest_point_sample(xyz, num_patches)
    centroid_xyz = index_points(xyz, fps_idx)                       # [B,S,3]
    dists = square_distance(centroid_xyz, xyz)                      # [B,S,N]
    knn_idx = jnp.argsort(dists, axis=-1)[:, :, :patch_size]        # [B,S,k]
    centroid_feat = index_points(feature, fps_idx)                  # [B,S,C]
    grouped_feat = index_points(feature, knn_idx)                   # [B,S,k,C]
    grouped_norm = grouped_feat - centroid_feat[:, :, None, :]
    groups = jnp.concatenate(
        [jnp.broadcast_to(centroid_feat[:, :, None, :], grouped_feat.shape),
         grouped_norm], axis=-1)                                    # [B,S,k,2C]
    return centroid_xyz, groups.reshape(B * num_patches, patch_size, 2 * C)


# --------------------------------------------------------------------------
# Parameters (deterministic synthetic init) + BN folding + dtype casting
# --------------------------------------------------------------------------
def init_params(key, in_channel, mlp):
    params = {"layers": [], "res": None}
    last = in_channel
    for out in mlp:
        key, *ks = jax.random.split(key, 7)
        W = jax.random.normal(ks[0], (out, last), jnp.float32) * 0.1
        b = jax.random.normal(ks[1], (out,), jnp.float32) * 0.1
        gamma = jax.random.uniform(ks[2], (out,), jnp.float32, 0.5, 1.5)
        beta = jax.random.normal(ks[3], (out,), jnp.float32) * 0.1
        mean = jax.random.normal(ks[4], (out,), jnp.float32) * 0.1
        var = jax.random.uniform(ks[5], (out,), jnp.float32, 0.5, 1.5)
        params["layers"].append((W, b, gamma, beta, mean, var))
        last = out
    D = mlp[-1]
    key, *ks = jax.random.split(key, 11)
    W1 = jax.random.normal(ks[0], (D, D), jnp.float32) * 0.1
    g1 = jax.random.uniform(ks[1], (D,), jnp.float32, 0.5, 1.5)
    be1 = jax.random.normal(ks[2], (D,), jnp.float32) * 0.1
    m1 = jax.random.normal(ks[3], (D,), jnp.float32) * 0.1
    v1 = jax.random.uniform(ks[4], (D,), jnp.float32, 0.5, 1.5)
    W2 = jax.random.normal(ks[5], (D, D), jnp.float32) * 0.1
    g2 = jax.random.uniform(ks[6], (D,), jnp.float32, 0.5, 1.5)
    be2 = jax.random.normal(ks[7], (D,), jnp.float32) * 0.1
    m2 = jax.random.normal(ks[8], (D,), jnp.float32) * 0.1
    v2 = jax.random.uniform(ks[9], (D,), jnp.float32, 0.5, 1.5)
    params["res"] = (W1, g1, be1, m1, v1, W2, g2, be2, m2, v2)
    return params


def fold_params(params):
    """Fold eval-mode BN into the preceding 1x1 conv. Done in f32."""
    layers = []
    for (W, b, gamma, beta, mean, var) in params["layers"]:
        scale = gamma / jnp.sqrt(var + EPS)
        shift = beta - mean * scale
        A = (W * scale[:, None]).T                      # [Cin, Cout]
        c = (b * scale + shift)[None, :]                # [1, Cout]
        layers.append((A, c))
    W1, g1, be1, m1, v1, W2, g2, be2, m2, v2 = params["res"]
    s1 = g1 / jnp.sqrt(v1 + EPS); t1 = be1 - m1 * s1
    s2 = g2 / jnp.sqrt(v2 + EPS); t2 = be2 - m2 * s2
    res = [(W1 * s1[:, None]).T, t1[None, :],
           (W2 * s2[:, None]).T, t2[None, :]]
    return {"layers": layers, "res": res}


def cast_folded(folded, wdtype=jnp.bfloat16):
    """Weights -> bf16 for native MXU rate; biases stay f32."""
    layers = [(A.astype(wdtype), c.astype(jnp.float32))
              for A, c in folded["layers"]]
    R1, r1, R2, r2 = folded["res"]
    res = [R1.astype(wdtype), r1.astype(jnp.float32),
           R2.astype(wdtype), r2.astype(jnp.float32)]
    return {"layers": layers, "res": res}


# --------------------------------------------------------------------------
# Pure-JAX reference (raw, un-folded f32 params) for correctness check
# --------------------------------------------------------------------------
def reference_forward(groups_flat, params):
    h = groups_flat
    for (W, b, gamma, beta, mean, var) in params["layers"]:
        z = jnp.einsum("pkc,oc->pko", h, W) + b
        z = (z - mean) * (gamma / jnp.sqrt(var + EPS)) + beta
        h = jnp.maximum(z, 0.0)
    m = jnp.max(h, axis=1)
    a = jnp.mean(h, axis=1)
    W1, g1, be1, m1, v1, W2, g2, be2, m2, v2 = params["res"]
    z1 = m @ W1.T
    z1 = (z1 - m1) * (g1 / jnp.sqrt(v1 + EPS)) + be1
    z1 = jnp.where(z1 > 0, z1, 0.2 * z1)
    z2 = z1 @ W2.T
    z2 = (z2 - m2) * (g2 / jnp.sqrt(v2 + EPS)) + be2
    w = z2 + m
    w = jnp.where(w > 0, w, 0.2 * w)
    return w, a


# --------------------------------------------------------------------------
if __name__ == "__main__":
    B, N, C = 2, 64, 4           # xyz [B,N,3], feature [B,N,C]
    S, k = 16, 8                 # num_patches, patch_size
    mlp = [32, 64]               # PatchAbstraction(S, k, in_channel=2C, mlp)

    key = jax.random.PRNGKey(0)
    kx, kf, kp = jax.random.split(key, 3)
    xyz = jax.random.normal(kx, (B, N, 3), jnp.float32)
    feature = jax.random.normal(kf, (B, N, C), jnp.float32)
    params = init_params(kp, 2 * C, mlp)

    centroid_xyz, groups = build_groups(xyz, feature, S, k)     # [B*S, k, 2C]
    folded = cast_folded(fold_params(params))
    max_p, avg_p = patch_abstraction_pallas(groups, folded)

    D = mlp[-1]
    max_patches = max_p.reshape(B, S, D)
    avg_patches = avg_p.reshape(B, S, D)
    jax.block_until_ready((centroid_xyz, max_patches, avg_patches))

    # bf16 inputs/weights with f32 accumulation vs the raw f32 reference:
    # slightly loosened tolerance (bf16 quantization of groups + weights).
    ref_max, ref_avg = reference_forward(groups, params)
    assert jnp.allclose(max_p, ref_max, rtol=2e-2, atol=2e-2)
    assert jnp.allclose(avg_p, ref_avg, rtol=2e-2, atol=2e-2)
    assert centroid_xyz.shape == (B, S, 3)
    assert max_patches.shape == (B, S, D) and avg_patches.shape == (B, S, D)

    print("KERNEL_OK")
</pallas_src>

<mosaic_0001>
module attributes {stable_mosaic.version = 11 : i64} {
  func.func @kernel(%arg0: i32, %arg1: memref<64x8xbf16, #tpu.memory_space<vmem>>, %arg2: memref<8x32xbf16, #tpu.memory_space<vmem>>, %arg3: memref<1x32xf32, #tpu.memory_space<vmem>>, %arg4: memref<32x64xbf16, #tpu.memory_space<vmem>>, %arg5: memref<1x64xf32, #tpu.memory_space<vmem>>, %arg6: memref<64x64xbf16, #tpu.memory_space<vmem>>, %arg7: memref<1x64xf32, #tpu.memory_space<vmem>>, %arg8: memref<64x64xbf16, #tpu.memory_space<vmem>>, %arg9: memref<1x64xf32, #tpu.memory_space<vmem>>, %arg10: memref<8x128xf32, #tpu.memory_space<vmem>>) attributes {dimension_semantics = [#tpu.dimension_semantics<parallel>], iteration_bounds = array<i64: 4>, scalar_prefetch = 0 : i64, scratch_operands = 0 : i64, tpu.core_type = #tpu.core_type<tc>, window_params = [{transform_indices = @transform_0, window_bounds = array<i64: 64, 8>}, {pipeline_mode = #tpu.pipeline_mode<synchronous>, transform_indices = @transform_1, window_bounds = array<i64: 8, 32>}, {pipeline_mode = #tpu.pipeline_mode<synchronous>, transform_indices = @transform_2, window_bounds = array<i64: 1, 32>}, {pipeline_mode = #tpu.pipeline_mode<synchronous>, transform_indices = @transform_3, window_bounds = array<i64: 32, 64>}, {pipeline_mode = #tpu.pipeline_mode<synchronous>, transform_indices = @transform_4, window_bounds = array<i64: 1, 64>}, {pipeline_mode = #tpu.pipeline_mode<synchronous>, transform_indices = @transform_5, window_bounds = array<i64: 64, 64>}, {pipeline_mode = #tpu.pipeline_mode<synchronous>, transform_indices = @transform_6, window_bounds = array<i64: 1, 64>}, {pipeline_mode = #tpu.pipeline_mode<synchronous>, transform_indices = @transform_7, window_bounds = array<i64: 64, 64>}, {pipeline_mode = #tpu.pipeline_mode<synchronous>, transform_indices = @transform_8, window_bounds = array<i64: 1, 64>}, {transform_indices = @transform_9, window_bounds = array<i64: 8, 128>}]} {
    %c0 = arith.constant 0 : index
    %c0_0 = arith.constant 0 : index
    %0 = vector.load %arg1[%c0, %c0_0] : memref<64x8xbf16, #tpu.memory_space<vmem>>, vector<64x8xbf16>
    %c0_1 = arith.constant 0 : index
    %c0_2 = arith.constant 0 : index
    %1 = vector.load %arg2[%c0_1, %c0_2] : memref<8x32xbf16, #tpu.memory_space<vmem>>, vector<8x32xbf16>
    %c0_3 = arith.constant 0 : index
    %c0_4 = arith.constant 0 : index
    %2 = vector.load %arg3[%c0_3, %c0_4] : memref<1x32xf32, #tpu.memory_space<vmem>>, vector<1x32xf32>
    %cst = arith.constant dense<0.000000e+00> : vector<64x32xf32>
    %3 = tpu.matmul %0, %1, %cst {dimension_numbers = #tpu.dot_dimension_numbers<[1], [0], [0], [1], [0, 0, 1, 1], [], []>} : vector<64x8xbf16>, vector<8x32xbf16>, vector<64x32xf32> -> vector<64x32xf32>
    %4 = vector.broadcast %2 : vector<1x32xf32> to vector<64x32xf32>
    %5 = arith.addf %3, %4 : vector<64x32xf32>
    %cst_5 = arith.constant 0.000000e+00 : f32
    %6 = vector.broadcast %cst_5 : f32 to vector<64x32xf32>
    %7 = arith.maximumf %5, %6 : vector<64x32xf32>
    %c0_6 = arith.constant 0 : index
    %c0_7 = arith.constant 0 : index
    %8 = vector.load %arg4[%c0_6, %c0_7] : memref<32x64xbf16, #tpu.memory_space<vmem>>, vector<32x64xbf16>
    %c0_8 = arith.constant 0 : index
    %c0_9 = arith.constant 0 : index
    %9 = vector.load %arg5[%c0_8, %c0_9] : memref<1x64xf32, #tpu.memory_space<vmem>>, vector<1x64xf32>
    %10 = arith.truncf %7 : vector<64x32xf32> to vector<64x32xbf16>
    %cst_10 = arith.constant dense<0.000000e+00> : vector<64x64xf32>
    %11 = tpu.matmul %10, %8, %cst_10 {dimension_numbers = #tpu.dot_dimension_numbers<[1], [0], [0], [1], [0, 0, 1, 1], [], []>} : vector<64x32xbf16>, vector<32x64xbf16>, vector<64x64xf32> -> vector<64x64xf32>
    %12 = vector.broadcast %9 : vector<1x64xf32> to vector<64x64xf32>
    %13 = arith.addf %11, %12 : vector<64x64xf32>
    %cst_11 = arith.constant 0.000000e+00 : f32
    %14 = vector.broadcast %cst_11 : f32 to vector<64x64xf32>
    %15 = arith.maximumf %13, %14 : vector<64x64xf32>
    %16 = vector.shape_cast %15 : vector<64x64xf32> to vector<8x8x64xf32>
    %cst_12 = arith.constant dense<0xFF800000> : vector<8x64xf32>
    %17 = vector.multi_reduction <maximumf>, %16, %cst_12 [1] : vector<8x8x64xf32> to vector<8x64xf32>
    %cst_13 = arith.constant dense<0.000000e+00> : vector<8x64xf32>
    %18 = vector.multi_reduction <add>, %16, %cst_13 [1] : vector<8x8x64xf32> to vector<8x64xf32>
    %cst_14 = arith.constant 1.250000e-01 : f32
    %19 = vector.broadcast %cst_14 : f32 to vector<8x64xf32>
    %20 = arith.mulf %18, %19 : vector<8x64xf32>
    %21 = arith.truncf %17 : vector<8x64xf32> to vector<8x64xbf16>
    %c0_15 = arith.constant 0 : index
    %c0_16 = arith.constant 0 : index
    %22 = vector.load %arg6[%c0_15, %c0_16] : memref<64x64xbf16, #tpu.memory_space<vmem>>, vector<64x64xbf16>
    %cst_17 = arith.constant dense<0.000000e+00> : vector<8x64xf32>
    %23 = tpu.matmul %21, %22, %cst_17 {dimension_numbers = #tpu.dot_dimension_numbers<[1], [0], [0], [1], [0, 0, 1, 1], [], []>} : vector<8x64xbf16>, vector<64x64xbf16>, vector<8x64xf32> -> vector<8x64xf32>
    %c0_18 = arith.constant 0 : index
    %c0_19 = arith.constant 0 : index
    %24 = vector.load %arg7[%c0_18, %c0_19] : memref<1x64xf32, #tpu.memory_space<vmem>>, vector<1x64xf32>
    %25 = vector.broadcast %24 : vector<1x64xf32> to vector<8x64xf32>
    %26 = arith.addf %23, %25 : vector<8x64xf32>
    %cst_20 = arith.constant 0.000000e+00 : f32
    %27 = vector.broadcast %cst_20 : f32 to vector<8x64xf32>
    %28 = arith.cmpf ogt, %26, %27 : vector<8x64xf32>
    %cst_21 = arith.constant 2.000000e-01 : f32
    %29 = vector.broadcast %cst_21 : f32 to vector<8x64xf32>
    %30 = arith.mulf %29, %26 : vector<8x64xf32>
    %31 = arith.select %28, %26, %30 : vector<8x64xi1>, vector<8x64xf32>
    %32 = arith.truncf %31 : vector<8x64xf32> to vector<8x64xbf16>
    %c0_22 = arith.constant 0 : index
    %c0_23 = arith.constant 0 : index
    %33 = vector.load %arg8[%c0_22, %c0_23] : memref<64x64xbf16, #tpu.memory_space<vmem>>, vector<64x64xbf16>
    %cst_24 = arith.constant dense<0.000000e+00> : vector<8x64xf32>
    %34 = tpu.matmul %32, %33, %cst_24 {dimension_numbers = #tpu.dot_dimension_numbers<[1], [0], [0], [1], [0, 0, 1, 1], [], []>} : vector<8x64xbf16>, vector<64x64xbf16>, vector<8x64xf32> -> vector<8x64xf32>
    %c0_25 = arith.constant 0 : index
    %c0_26 = arith.constant 0 : index
    %35 = vector.load %arg9[%c0_25, %c0_26] : memref<1x64xf32, #tpu.memory_space<vmem>>, vector<1x64xf32>
    %36 = vector.broadcast %35 : vector<1x64xf32> to vector<8x64xf32>
    %37 = arith.addf %34, %36 : vector<8x64xf32>
    %38 = arith.addf %37, %17 : vector<8x64xf32>
    %cst_27 = arith.constant 0.000000e+00 : f32
    %39 = vector.broadcast %cst_27 : f32 to vector<8x64xf32>
    %40 = arith.cmpf ogt, %38, %39 : vector<8x64xf32>
    %cst_28 = arith.constant 2.000000e-01 : f32
    %41 = vector.broadcast %cst_28 : f32 to vector<8x64xf32>
    %42 = arith.mulf %41, %38 : vector<8x64xf32>
    %43 = arith.select %40, %38, %42 : vector<8x64xi1>, vector<8x64xf32>
    %44 = tpu.concatenate %43, %20 in 1 : vector<8x64xf32>, vector<8x64xf32> -> vector<8x128xf32>
    %c0_29 = arith.constant 0 : index
    %c0_30 = arith.constant 0 : index
    %45 = vector.load %arg10[%c0_29, %c0_30] : memref<8x128xf32, #tpu.memory_space<vmem>>, vector<8x128xf32>
    tpu.vector_store %arg10[%c0_29, %c0_30], %44 {strides = array<i32>} : memref<8x128xf32, #tpu.memory_space<vmem>>, vector<8x128xf32>,
    return
  }
  func.func @transform_0(%arg0: i32) -> (i32, i32) {
    %c0_i32 = arith.constant 0 : i32
    %c0_i32_0 = arith.constant 0 : i32
    return %arg0, %c0_i32 : i32, i32
  }
  func.func @transform_1(%arg0: i32) -> (i32, i32) {
    %c0_i32 = arith.constant 0 : i32
    %c0_i32_0 = arith.constant 0 : i32
    %c0_i32_1 = arith.constant 0 : i32
    return %c0_i32, %c0_i32_0 : i32, i32
  }
  func.func @transform_2(%arg0: i32) -> (i32, i32) {
    %c0_i32 = arith.constant 0 : i32
    %c0_i32_0 = arith.constant 0 : i32
    %c0_i32_1 = arith.constant 0 : i32
    return %c0_i32, %c0_i32_0 : i32, i32
  }
  func.func @transform_3(%arg0: i32) -> (i32, i32) {
    %c0_i32 = arith.constant 0 : i32
    %c0_i32_0 = arith.constant 0 : i32
    %c0_i32_1 = arith.constant 0 : i32
    return %c0_i32, %c0_i32_0 : i32, i32
  }
  func.func @transform_4(%arg0: i32) -> (i32, i32) {
    %c0_i32 = arith.constant 0 : i32
    %c0_i32_0 = arith.constant 0 : i32
    %c0_i32_1 = arith.constant 0 : i32
    return %c0_i32, %c0_i32_0 : i32, i32
  }
  func.func @transform_5(%arg0: i32) -> (i32, i32) {
    %c0_i32 = arith.constant 0 : i32
    %c0_i32_0 = arith.constant 0 : i32
    %c0_i32_1 = arith.constant 0 : i32
    return %c0_i32, %c0_i32_0 : i32, i32
  }
  func.func @transform_6(%arg0: i32) -> (i32, i32) {
    %c0_i32 = arith.constant 0 : i32
    %c0_i32_0 = arith.constant 0 : i32
    %c0_i32_1 = arith.constant 0 : i32
    return %c0_i32, %c0_i32_0 : i32, i32
  }
  func.func @transform_7(%arg0: i32) -> (i32, i32) {
    %c0_i32 = arith.constant 0 : i32
    %c0_i32_0 = arith.constant 0 : i32
    %c0_i32_1 = arith.constant 0 : i32
    return %c0_i32, %c0_i32_0 : i32, i32
  }
  func.func @transform_8(%arg0: i32) -> (i32, i32) {
    %c0_i32 = arith.constant 0 : i32
    %c0_i32_0 = arith.constant 0 : i32
    %c0_i32_1 = arith.constant 0 : i32
    return %c0_i32, %c0_i32_0 : i32, i32
  }
  func.func @transform_9(%arg0: i32) -> (i32, i32) {
    %c0_i32 = arith.constant 0 : i32
    %c0_i32_0 = arith.constant 0 : i32
    return %arg0, %c0_i32 : i32, i32
  }
}

module attributes {stable_mosaic.version = 11 : i64} {
  func.func @kernel(%arg0: i32, %arg1: memref<64x8xbf16, #tpu.memory_space<vmem>>, %arg2: memref<8x32xbf16, #tpu.memory_space<vmem>>, %arg3: memref<1x32xf32, #tpu.memory_space<vmem>>, %arg4: memref<32x64xbf16, #tpu.memory_space<vmem>>, %arg5: memref<1x64xf32, #tpu.memory_space<vmem>>, %arg6: memref<64x64xbf16, #tpu.memory_space<vmem>>, %arg7: memref<1x64xf32, #tpu.memory_space<vmem>>, %arg8: memref<64x64xbf16, #tpu.memory_space<vmem>>, %arg9: memref<1x64xf32, #tpu.memory_space<vmem>>, %arg10: memref<8x128xf32, #tpu.memory_space<vmem>>) attributes {dimension_semantics = [#tpu.dimension_semantics<parallel>], iteration_bounds = array<i64: 4>, scalar_prefetch = 0 : i64, scratch_operands = 0 : i64, tpu.core_type = #tpu.core_type<tc>, window_params = [{transform_indices = @transform_0, window_bounds = array<i64: 64, 8>}, {pipeline_mode = #tpu.pipeline_mode<synchronous>, transform_indices = @transform_1, window_bounds = array<i64: 8, 32>}, {pipeline_mode = #tpu.pipeline_mode<synchronous>, transform_indices = @transform_2, window_bounds = array<i64: 1, 32>}, {pipeline_mode = #tpu.pipeline_mode<synchronous>, transform_indices = @transform_3, window_bounds = array<i64: 32, 64>}, {pipeline_mode = #tpu.pipeline_mode<synchronous>, transform_indices = @transform_4, window_bounds = array<i64: 1, 64>}, {pipeline_mode = #tpu.pipeline_mode<synchronous>, transform_indices = @transform_5, window_bounds = array<i64: 64, 64>}, {pipeline_mode = #tpu.pipeline_mode<synchronous>, transform_indices = @transform_6, window_bounds = array<i64: 1, 64>}, {pipeline_mode = #tpu.pipeline_mode<synchronous>, transform_indices = @transform_7, window_bounds = array<i64: 64, 64>}, {pipeline_mode = #tpu.pipeline_mode<synchronous>, transform_indices = @transform_8, window_bounds = array<i64: 1, 64>}, {transform_indices = @transform_9, window_bounds = array<i64: 8, 128>}]} {
    %c0 = arith.constant 0 : index
    %c0_0 = arith.constant 0 : index
    %0 = vector.load %arg1[%c0, %c0_0] : memref<64x8xbf16, #tpu.memory_space<vmem>>, vector<64x8xbf16>
    %c0_1 = arith.constant 0 : index
    %c0_2 = arith.constant 0 : index
    %1 = vector.load %arg2[%c0_1, %c0_2] : memref<8x32xbf16, #tpu.memory_space<vmem>>, vector<8x32xbf16>
    %c0_3 = arith.constant 0 : index
    %c0_4 = arith.constant 0 : index
    %2 = vector.load %arg3[%c0_3, %c0_4] : memref<1x32xf32, #tpu.memory_space<vmem>>, vector<1x32xf32>
    %cst = arith.constant dense<0.000000e+00> : vector<64x32xf32>
    %3 = tpu.matmul %0, %1, %cst {dimension_numbers = #tpu.dot_dimension_numbers<[1], [0], [0], [1], [0, 0, 1, 1], [], []>} : vector<64x8xbf16>, vector<8x32xbf16>, vector<64x32xf32> -> vector<64x32xf32>
    %4 = vector.broadcast %2 : vector<1x32xf32> to vector<64x32xf32>
    %5 = arith.addf %3, %4 : vector<64x32xf32>
    %cst_5 = arith.constant 0.000000e+00 : f32
    %6 = vector.broadcast %cst_5 : f32 to vector<64x32xf32>
    %7 = arith.maximumf %5, %6 : vector<64x32xf32>
    %c0_6 = arith.constant 0 : index
    %c0_7 = arith.constant 0 : index
    %8 = vector.load %arg4[%c0_6, %c0_7] : memref<32x64xbf16, #tpu.memory_space<vmem>>, vector<32x64xbf16>
    %c0_8 = arith.constant 0 : index
    %c0_9 = arith.constant 0 : index
    %9 = vector.load %arg5[%c0_8, %c0_9] : memref<1x64xf32, #tpu.memory_space<vmem>>, vector<1x64xf32>
    %10 = arith.truncf %7 : vector<64x32xf32> to vector<64x32xbf16>
    %cst_10 = arith.constant dense<0.000000e+00> : vector<64x64xf32>
    %11 = tpu.matmul %10, %8, %cst_10 {dimension_numbers = #tpu.dot_dimension_numbers<[1], [0], [0], [1], [0, 0, 1, 1], [], []>} : vector<64x32xbf16>, vector<32x64xbf16>, vector<64x64xf32> -> vector<64x64xf32>
    %12 = vector.broadcast %9 : vector<1x64xf32> to vector<64x64xf32>
    %13 = arith.addf %11, %12 : vector<64x64xf32>
    %cst_11 = arith.constant 0.000000e+00 : f32
    %14 = vector.broadcast %cst_11 : f32 to vector<64x64xf32>
    %15 = arith.maximumf %13, %14 : vector<64x64xf32>
    %16 = vector.shape_cast %15 : vector<64x64xf32> to vector<8x8x64xf32>
    %cst_12 = arith.constant dense<0xFF800000> : vector<8x64xf32>
    %17 = vector.multi_reduction <maximumf>, %16, %cst_12 [1] : vector<8x8x64xf32> to vector<8x64xf32>
    %cst_13 = arith.constant dense<0.000000e+00> : vector<8x64xf32>
    %18 = vector.multi_reduction <add>, %16, %cst_13 [1] : vector<8x8x64xf32> to vector<8x64xf32>
    %cst_14 = arith.constant 1.250000e-01 : f32
    %19 = vector.broadcast %cst_14 : f32 to vector<8x64xf32>
    %20 = arith.mulf %18, %19 : vector<8x64xf32>
    %21 = arith.truncf %17 : vector<8x64xf32> to vector<8x64xbf16>
    %c0_15 = arith.constant 0 : index
    %c0_16 = arith.constant 0 : index
    %22 = vector.load %arg6[%c0_15, %c0_16] : memref<64x64xbf16, #tpu.memory_space<vmem>>, vector<64x64xbf16>
    %cst_17 = arith.constant dense<0.000000e+00> : vector<8x64xf32>
    %23 = tpu.matmul %21, %22, %cst_17 {dimension_numbers = #tpu.dot_dimension_numbers<[1], [0], [0], [1], [0, 0, 1, 1], [], []>} : vector<8x64xbf16>, vector<64x64xbf16>, vector<8x64xf32> -> vector<8x64xf32>
    %c0_18 = arith.constant 0 : index
    %c0_19 = arith.constant 0 : index
    %24 = vector.load %arg7[%c0_18, %c0_19] : memref<1x64xf32, #tpu.memory_space<vmem>>, vector<1x64xf32>
    %25 = vector.broadcast %24 : vector<1x64xf32> to vector<8x64xf32>
    %26 = arith.addf %23, %25 : vector<8x64xf32>
    %cst_20 = arith.constant 0.000000e+00 : f32
    %27 = vector.broadcast %cst_20 : f32 to vector<8x64xf32>
    %28 = arith.cmpf ogt, %26, %27 : vector<8x64xf32>
    %cst_21 = arith.constant 2.000000e-01 : f32
    %29 = vector.broadcast %cst_21 : f32 to vector<8x64xf32>
    %30 = arith.mulf %29, %26 : vector<8x64xf32>
    %31 = arith.select %28, %26, %30 : vector<8x64xi1>, vector<8x64xf32>
    %32 = arith.truncf %31 : vector<8x64xf32> to vector<8x64xbf16>
    %c0_22 = arith.constant 0 : index
    %c0_23 = arith.constant 0 : index
    %33 = vector.load %arg8[%c0_22, %c0_23] : memref<64x64xbf16, #tpu.memory_space<vmem>>, vector<64x64xbf16>
    %cst_24 = arith.constant dense<0.000000e+00> : vector<8x64xf32>
    %34 = tpu.matmul %32, %33, %cst_24 {dimension_numbers = #tpu.dot_dimension_numbers<[1], [0], [0], [1], [0, 0, 1, 1], [], []>} : vector<8x64xbf16>, vector<64x64xbf16>, vector<8x64xf32> -> vector<8x64xf32>
    %c0_25 = arith.constant 0 : index
    %c0_26 = arith.constant 0 : index
    %35 = vector.load %arg9[%c0_25, %c0_26] : memref<1x64xf32, #tpu.memory_space<vmem>>, vector<1x64xf32>
    %36 = vector.broadcast %35 : vector<1x64xf32> to vector<8x64xf32>
    %37 = arith.addf %34, %36 : vector<8x64xf32>
    %38 = arith.addf %37, %17 : vector<8x64xf32>
    %cst_27 = arith.constant 0.000000e+00 : f32
    %39 = vector.broadcast %cst_27 : f32 to vector<8x64xf32>
    %40 = arith.cmpf ogt, %38, %39 : vector<8x64xf32>
    %cst_28 = arith.constant 2.000000e-01 : f32
    %41 = vector.broadcast %cst_28 : f32 to vector<8x64xf32>
    %42 = arith.mulf %41, %38 : vector<8x64xf32>
    %43 = arith.select %40, %38, %42 : vector<8x64xi1>, vector<8x64xf32>
    %44 = tpu.concatenate %43, %20 in 1 : vector<8x64xf32>, vector<8x64xf32> -> vector<8x128xf32>
    %c0_29 = arith.constant 0 : index
    %c0_30 = arith.constant 0 : index
    %45 = vector.load %arg10[%c0_29, %c0_30] : memref<8x128xf32, #tpu.memory_space<vmem>>, vector<8x128xf32>
    tpu.vector_store %arg10[%c0_29, %c0_30], %44 {strides = array<i32>} : memref<8x128xf32, #tpu.memory_space<vmem>>, vector<8x128xf32>,
    return
  }
  func.func @transform_0(%arg0: i32) -> (i32, i32) {
    %c0_i32 = arith.constant 0 : i32
    %c0_i32_0 = arith.constant 0 : i32
    return %arg0, %c0_i32 : i32, i32
  }
  func.func @transform_1(%arg0: i32) -> (i32, i32) {
    %c0_i32 = arith.constant 0 : i32
    %c0_i32_0 = arith.constant 0 : i32
    %c0_i32_1 = arith.constant 0 : i32
    return %c0_i32, %c0_i32_0 : i32, i32
  }
  func.func @transform_2(%arg0: i32) -> (i32, i32) {
    %c0_i32 = arith.constant 0 : i32
    %c0_i32_0 = arith.constant 0 : i32
    %c0_i32_1 = arith.constant 0 : i32
    return %c0_i32, %c0_i32_0 : i32, i32
  }
  func.func @transform_3(%arg0: i32) -> (i32, i32) {
    %c0_i32 = arith.constant 0 : i32
    %c0_i32_0 = arith.constant 0 : i32
    %c0_i32_1 = arith.constant 0 : i32
    return %c0_i32, %c0_i32_0 : i32, i32
  }
  func.func @transform_4(%arg0: i32) -> (i32, i32) {
    %c0_i32 = arith.constant 0 : i32
    %c0_i32_0 = arith.constant 0 : i32
    %c0_i32_1 = arith.constant 0 : i32
    return %c0_i32, %c0_i32_0 : i32, i32
  }
  func.func @transform_5(%arg0: i32) -> (i32, i32) {
    %c0_i32 = arith.constant 0 : i32
    %c0_i32_0 = arith.constant 0 : i32
    %c0_i32_1 = arith.constant 0 : i32
    return %c0_i32, %c0_i32_0 : i32, i32
  }
  func.func @transform_6(%arg0: i32) -> (i32, i32) {
    %c0_i32 = arith.constant 0 : i32
    %c0_i32_0 = arith.constant 0 : i32
    %c0_i32_1 = arith.constant 0 : i32
    return %c0_i32, %c0_i32_0 : i32, i32
  }
  func.func @transform_7(%arg0: i32) -> (i32, i32) {
    %c0_i32 = arith.constant 0 : i32
    %c0_i32_0 = arith.constant 0 : i32
    %c0_i32_1 = arith.constant 0 : i32
    return %c0_i32, %c0_i32_0 : i32, i32
  }
  func.func @transform_8(%arg0: i32) -> (i32, i32) {
    %c0_i32 = arith.constant 0 : i32
    %c0_i32_0 = arith.constant 0 : i32
    %c0_i32_1 = arith.constant 0 : i32
    return %c0_i32, %c0_i32_0 : i32, i32
  }
  func.func @transform_9(%arg0: i32) -> (i32, i32) {
    %c0_i32 = arith.constant 0 : i32
    %c0_i32_0 = arith.constant 0 : i32
    return %arg0, %c0_i32 : i32, i32
  }
}

</mosaic_0001>

<bundles_post_ra>
// kernel: tpu_custom_call.1
= control target key start
LH: loop header
LB: loop body
LE: loop exit
PB: predicated region body
PF: predicated region fallthrough
CT: control target
= control target key end

     0   :  { %14 = vsyncpa [#allocation3], 0  ;;  %s1324_s0 = inlined_call_operand.vmem [shape: bf16[256,8], index: 0, kind: input, shape index: {}]   ;;  %s1325_s1 = inlined_call_operand.vmem [shape: bf16[8,32], index: 1, kind: input, shape index: {}]   ;;  %s1326_s2 = inlined_call_operand.vmem [shape: f32[1,32], index: 2, kind: input, shape index: {}]   ;;  %s1327_s3 = inlined_call_operand.vmem [shape: bf16[32,64], index: 3, kind: input, shape index: {}]   ;;  %s1328_s4 = inlined_call_operand.vmem [shape: f32[1,64], index: 4, kind: input, shape index: {}]   ;;  %s1329_s5 = inlined_call_operand.vmem [shape: bf16[64,64], index: 5, kind: input, shape index: {}]   ;;  %s1330_s6 = inlined_call_operand.vmem [shape: f32[1,64], index: 6, kind: input, shape index: {}]   ;;  %s1331_s7 = inlined_call_operand.vmem [shape: bf16[64,64], index: 7, kind: input, shape index: {}]   ;;  %s1332_s8 = inlined_call_operand.vmem [shape: f32[1,64], index: 8, kind: input, shape index: {}]   ;;  %s1333_s9 = inlined_call_operand.hbm [shape: f32[32,128], index: 9, kind: output, shape index: {}]  }
   0x1   :  { %16 = vsyncpa [#allocation3 + $0x1], 0  ;;  %s1131_s30 = smov 0   ;;  %s1133_s10 = smov 0  }
   0x2   :  { %s1135_s11 = smov 0   ;;  %s1137_s12 = smov 0  }
   0x3 LB: > { %s877_s13 = sadd.s32 4294967295, %s1078_s12   ;;  %s878_s14 = sadd.s32 4294967294, %s1078_s12   ;;  %s1078_s12 = sphi %s1137_s12, %s1339_s12   ;;  %s1074_s11 = sphi %s1135_s11, %s1338_s11   ;;  %s1070_s10 = sphi %s1133_s10, %s1337_s10   ;;  %s1066_s30 = sphi %s1131_s30, %s1336_s30  }
   0x4   : > { %s1154_s15 = sadd.s32 1, %s1078_s12   ;;  %s223_s16 = sadd.s32 1, %s1074_s11 }
   0x5   : > { %s220_s17 = ssub.s32 %s1078_s12, %s1154_s15  ;;  %p233_p0 = scmp.ne.s32.totalorder %s1074_s11, %s1070_s10 }
   0x6   : > { %p221_p1 = scmp.eq.s32.totalorder %s220_s17, 0  ;;  %p234_p2 = scmp.eq.s32.totalorder %s877_s13, 3 }
   0x7   : > { %p239_p3 = scmp.ne.s32.totalorder %s1070_s10, %s1066_s30  ;;  %p240_p4 = scmp.eq.s32.totalorder %s878_s14, 3 }
   0x8   : > { %s1164_s18 = scalar_select %p221_p1, %s1074_s11, %s223_s16  }
   0x9   : > { %p1166_p5 = por %p234_p2, %p233_p0  ;;  %p1170_p6 = por %p240_p4, %p239_p3 }
   0xa   : > { %p881_p7 = scmp.ge.s32.totalorder %s1078_s12, 1  ;;  %p291_p8 = scmp.lt.s32.totalorder %s1078_s12, 5 }
   0xc   : > { %p292_p9 = pnand %p881_p7, %p291_p8 }
   0xd   : > { %s1179_s23 = sshll.u32 (!%p292_p9), %s877_s13, 3  ;;  %s1080_s17 = smov (!%p292_p9), 64  }
   0xe   : > { %295 = sbr.rel (%p292_p9) target bundleno = 638 (0x27e), region = 56  ;;  %p328_p10 = scmp.lt.s32.totalorder (!%p292_p9), %s1179_s23, 31 }
   0xf   : > { %s324_s16 = sand.u32 (!%p292_p9), 1, %s1070_s10   ;;  %s814_s26 = scalar_lea.hbm (!%p292_p9), %s1333_s9, %s1179_s23 }
  0x10   : > { %s882_s22 = sshll.u32 (!%p292_p9), %s324_s16, 3  ;;  %s818_s29 = sshll.u32 (!%p292_p9), %s814_s26, 4  ;;  %s819_s29 = int_to_ptr.hbm [resolvable:$true] %s818_s29 }
  0x11   : > { %s326_s27 = scalar_lea.vmem (!%p292_p9), [#allocation2], %s882_s22  ;;  %s804_s13 = scalar_lea.sflag (!%p292_p9), [#allocation3], %s324_s16 }
  0x12   : > { %s1030_s14 = sshra.s32 (!%p292_p9), %s819_s29, 4  ;;  %s1036_s22 = scalar_lea.hbm (!%p292_p9), %s1333_s9, 32  ;;  %s1031_s14 = int_to_ptr.hbm [resolvable:$true] %s1030_s14 }
  0x13   : > { %v342_v0 = vld [vmem:[%s1325_s1] sm:$0xf]  ;;  %vm380_vm0 = vcmask 1043456   ;;  %s329_s24 = scalar_select %p328_p10, %s1179_s23, 31  ;;  %vm367_vm1 = vcmask 64512   ;;  %v960_v6 = vld [vmem:[%s1327_s3 + $0x8] sm:$0xff] }
  0x14   : > { %v382_v1 = vsel %vm380_vm0, %v342_v0, 0  ;;  %464 = vmatpush.bf16.msra.mxu1 %v960_v6  ;;  %970 = vmatpush.bf16.msra.mxu2 %v960_v6  ;;  %v959_v7 = vld [vmem:[%s1327_s3] sm:$0xff]  ;;  %vm445_vm2 = vcmask 261120   ;;  %vm495_vm3 = vcmask 523264   ;;  %vm652_vm4 = vcmask 1041409   ;;  %p1037_p0 = scmp.lt.s32.totalorder %s1031_s14, %s1333_s9 }
  0x15   : > { %391 = vmatpush.bf16.msra.mxu0 %v382_v1  ;;  %969 = vmatpush.bf16.msra.mxu3 %v382_v1  ;;  %s884_s25 = sshll.u32 %s329_s24, 2  ;;  %v1012_v9 = vld [vmem:[%s1326_s2] ss:$0 sm:$0xff]  ;;  %vm654_vm5 = vcmask 1042434   ;;  %vm656_vm6 = vcmask 1043459   ;;  %vm658_vm7 = vcmask 1044484  }
  0x16   : > { %s331_s28 = scalar_lea.vmem %s1324_s0, %s884_s25  ;;  %v1202_v37 = vld [vmem:[%s1328_s4] ss:$0 sm:$0xff]  ;;  %vm660_vm8 = vcmask 1045509   ;;  %vm662_vm9 = vcmask 1046534   ;;  %vm664_vm10 = vcmask 1047559  }
  0x17   : > { %v955_v2 = vld [vmem:[%s331_s28] sm:$0xff]  ;;  %v958_v3 = vld [vmem:[%s331_s28 + $0x18] sm:$0xff]  ;;  %v956_v4 = vld [vmem:[%s331_s28 + $0x8] sm:$0xff] }
  0x18   : > { %901 = vmatmul.msk.bf16.vlgmr.msra.gmra.mxu0 %vm367_vm1, %v955_v2  ;;  %904 = vmatmul.msk.bf16.vlgmr.msra.gmra.mxu3 %vm367_vm1, %v958_v3  ;;  %v957_v5 = vld [vmem:[%s331_s28 + $0x10] sm:$0xff]  ;;  %s816_s28 = sshll.u32 %s326_s27, 4  ;;  %s817_s28 = int_to_ptr.vmem [resolvable:$true] %s816_s28 }
  0x19   : > { %465 = vmatpush.bf16.msra.mxu1 %v959_v7  ;;  %971 = vmatpush.bf16.msra.mxu2 %v959_v7 }
  0x28   : > { %902 = vmatmul.msk.bf16.gmra.mxu0 %vm367_vm1, %v956_v4 }
  0x38   : > { %903 = vmatmul.msk.bf16.gmra.mxu0 %vm367_vm1, %v957_v5 }
  0x95   : > { %v393_v8 = vpop.f32.mrf.mxu0 }
  0x96   : > { %v394_v11 = vadd.f32 %v1012_v9, %v393_v8  ;;  %v964_v8 = vld [vmem:[%s1329_s5 + $0x18] sm:$0xff] }
  0x97   : > { %698 = vmatpush.bf16.msrb.mxu2 %v964_v8 }
  0x98   : > { %v413_v14 = vmax.f32 %v394_v11, 0.0 }
  0x9b   : > { %v408_v10 = vpop.f32.mrf.mxu3 }
  0x9c   : > { %v409_v15 = vadd.f32 %v1012_v9, %v408_v10 }
  0x9d   : > { %v395_v12 = vpop.f32.mrf.mxu0 }
  0x9e   : > { %v396_v13 = vadd.f32 %v1012_v9, %v395_v12  ;;  %v419_v19 = vmax.f32 %v409_v15, 0.0 }
  0xa0   : > { %v414_v16 = vmax.f32 %v396_v13, 0.0 }
  0xa2   : > { %v426_v17 = vpack.c.bf16 %v414_v16, %v413_v14 }
  0xa3   : > { %v410_v18 = vpop.f32.mrf.mxu3 }
  0xa4   : > { %v411_v20 = vadd.f32 %v1012_v9, %v410_v18  ;;  %913 = vmatmul.msk.bf16.vlgmr.msra.gmra.mxu1 %vm445_vm2, %v426_v17 }
  0xa5   : > { %v398_v21 = vpop.f32.mrf.mxu0 }
  0xa6   : > { %v420_v22 = vmax.f32 %v411_v20, 0.0  ;;  %v399_v24 = vadd.f32 %v1012_v9, %v398_v21 }
  0xa8   : > { %v429_v23 = vpack.c.bf16 %v420_v22, %v419_v19  ;;  %v415_v27 = vmax.f32 %v399_v24, 0.0  ;;  %v963_v22 = vld [vmem:[%s1329_s5 + $0x10] sm:$0xff] }
  0xa9   : > { %699 = vmatpush.bf16.msrb.mxu2 %v963_v22 }
  0xaa   : > { %916 = vmatmul.msk.bf16.vlgmr.msra.gmra.mxu2 %vm445_vm2, %v429_v23 }
  0xad   : > { %v400_v25 = vpop.f32.mrf.mxu0 }
  0xae   : > { %v401_v26 = vadd.f32 %v1012_v9, %v400_v25 }
  0xb0   : > { %v416_v28 = vmax.f32 %v401_v26, 0.0 }
  0xb2   : > { %v427_v29 = vpack.c.bf16 %v416_v28, %v415_v27  ;;  %v962_v28 = vld [vmem:[%s1329_s5 + $0x8] sm:$0xff] }
  0xb3   : > { %700 = vmatpush.bf16.msrb.mxu2 %v962_v28 }
  0xb4   : > { %914 = vmatmul.msk.bf16.gmra.mxu1 %vm445_vm2, %v427_v29 }
  0xb5   : > { %v403_v30 = vpop.f32.mrf.mxu0 }
  0xb6   : > { %v404_v31 = vadd.f32 %v1012_v9, %v403_v30 }
  0xb8   : > { %v417_v34 = vmax.f32 %v404_v31, 0.0 }
  0xbd   : > { %v405_v32 = vpop.f32.mrf.mxu0 }
  0xbe   : > { %v406_v33 = vadd.f32 %v1012_v9, %v405_v32 }
  0xc0   : > { %v418_v35 = vmax.f32 %v406_v33, 0.0 }
  0xc2   : > { %v428_v36 = vpack.c.bf16 %v418_v35, %v417_v34 }
  0xc4   : > { %915 = vmatmul.msk.bf16.gmra.mxu1 %vm445_vm2, %v428_v36 }
 0x121   : > { %v467_v38 = vpop.f32.mrf.mxu1 }
 0x122   : > { %v468_v39 = vadd.f32 %v1202_v37, %v467_v38 }
 0x124   : > { %v487_v40 = vmax.f32 %v468_v39, 0.0 }
 0x126   : > { %v496_v41 = vsel %vm495_vm3, %v487_v40, -inf  ;;  %v552_v44 = vsel %vm495_vm3, %v487_v40, 0.0 }
 0x127   : > { %v497_v42 = vrot.slane %v496_v41, 4  ;;  %v553_v47 = vrot.slane %v552_v44, 4 }
 0x129   : > { %v498_v43 = vmax.f32 %v496_v41, %v497_v42  ;;  %v469_v45 = vpop.f32.mrf.mxu1  ;;  %v554_v53 = vadd.f32 %v553_v47, %v552_v44  ;;  %v961_v44 = vld [vmem:[%s1329_s5] sm:$0xff] }
 0x12a   : > { %v470_v46 = vadd.f32 %v1202_v37, %v469_v45  ;;  %701 = vmatpush.bf16.msrb.mxu2 %v961_v44 }
 0x12b   : > { %v499_v49 = vrot.slane %v498_v43, 2  ;;  %v555_v62 = vrot.slane %v554_v53, 2 }
 0x12c   : > { %v488_v48 = vmax.f32 %v470_v46, 0.0 }
 0x12d   : > { %v482_v50 = vpop.f32.mrf.mxu2  ;;  %v500_v55 = vmax.f32 %v498_v43, %v499_v49  ;;  %v556_v9 = vadd.f32 %v555_v62, %v554_v53 }
 0x12e   : > { %v503_v51 = vsel %vm495_vm3, %v488_v48, -inf  ;;  %v559_v54 = vsel %vm495_vm3, %v488_v48, 0.0  ;;  %v483_v57 = vadd.f32 %v1202_v37, %v482_v50 }
 0x12f   : > { %v504_v52 = vrot.slane %v503_v51, 4  ;;  %v560_v61 = vrot.slane %v559_v54, 4  ;;  %v501_v0 = vrot.slane %v500_v55, 1  ;;  %v557_v23 = vrot.slane %v556_v9, 1 }
 0x130   : > { %v493_v2 = vmax.f32 %v483_v57, 0.0 }
 0x131   : > { %v505_v56 = vmax.f32 %v503_v51, %v504_v52  ;;  %v472_v58 = vpop.f32.mrf.mxu1  ;;  %v561_v6 = vadd.f32 %v560_v61, %v559_v54  ;;  %v502_v11 = vmax.f32 %v500_v55, %v501_v0  ;;  %v558_v34 = vadd.f32 %v557_v23, %v556_v9 }
 0x132   : > { %v473_v59 = vadd.f32 %v1202_v37, %v472_v58  ;;  %v538_v13 = vsel %vm495_vm3, %v493_v2, -inf  ;;  %v594_v25 = vsel %vm495_vm3, %v493_v2, 0.0 }
 0x133   : > { %v506_v60 = vrot.slane %v505_v56, 2  ;;  %v562_v18 = vrot.slane %v561_v6, 2  ;;  %v539_v24 = vrot.slane %v538_v13, 4  ;;  %v595_v31 = vrot.slane %v594_v25, 4 }
 0x134   : > { %v489_v63 = vmax.f32 %v473_v59, 0.0  ;;  %v616_v48 = vpack.c.bf16 %v502_v11, %v502_v11 }
 0x135   : > { %v507_v1 = vmax.f32 %v505_v56, %v506_v60  ;;  %v484_v3 = vpop.f32.mrf.mxu2  ;;  %v563_v30 = vadd.f32 %v562_v18, %v561_v6  ;;  %v540_v35 = vmax.f32 %v538_v13, %v539_v24  ;;  %v596_v50 = vadd.f32 %v595_v31, %v594_v25 }
 0x136   : > { %v510_v4 = vsel %vm495_vm3, %v489_v63, -inf  ;;  %v485_v10 = vadd.f32 %v1202_v37, %v484_v3  ;;  %v566_v16 = vsel %vm495_vm3, %v489_v63, 0.0  ;;  %v608_v56 = vmul.f32 0.125, %v558_v34 }
 0x137   : > { %v508_v5 = vrot.slane %v507_v1, 1  ;;  %v511_v7 = vrot.slane %v510_v4, 4  ;;  %v567_v27 = vrot.slane %v566_v16, 4  ;;  %v564_v49 = vrot.slane %v563_v30, 1 }
 0x138   : > { %v494_v21 = vmax.f32 %v485_v10, 0.0  ;;  %v541_v57 = vrot.slane %v540_v35, 2  ;;  %v597_v63 = vrot.slane %v596_v50, 2  ;;  %v644_v3 = vunpack.c.l.b16 %v616_v48 }
 0x139   : > { %v1217_v12 = vmax.f32 %v507_v1, %v508_v5  ;;  %v512_v14 = vmax.f32 %v510_v4, %v511_v7  ;;  %v474_v15 = vpop.f32.mrf.mxu1  ;;  %v568_v40 = vadd.f32 %v567_v27, %v566_v16  ;;  %v565_v4 = vadd.f32 %v564_v49, %v563_v30 }
 0x13a   : > { %v475_v17 = vadd.f32 %v1202_v37, %v474_v15  ;;  %v545_v33 = vsel %vm495_vm3, %v494_v21, -inf  ;;  %v601_v41 = vsel %vm495_vm3, %v494_v21, 0.0  ;;  %v542_v7 = vmax.f32 %v540_v35, %v541_v57 }
 0x13b   : > { %v771_v19 = vsel %vm652_vm4, %v1217_v12, %v502_v11  ;;  %v513_v20 = vrot.slane %v512_v14, 2  ;;  %v546_v45 = vrot.slane %v545_v33, 4  ;;  %v602_v52 = vrot.slane %v601_v41, 4 }
 0x13c   : > { %v490_v29 = vmax.f32 %v475_v17, 0.0  ;;  %v569_v58 = vrot.slane %v568_v40, 2  ;;  %v598_v16 = vadd.f32 %v597_v63, %v596_v50  ;;  %v617_v24 = vpack.c.bf16 %v1217_v12, %v1217_v12 }
 0x13d   : > { %v514_v26 = vmax.f32 %v512_v14, %v513_v20  ;;  %v547_v59 = vmax.f32 %v545_v33, %v546_v45  ;;  %v603_v5 = vadd.f32 %v602_v52, %v601_v41  ;;  %v609_v20 = vmul.f32 0.125, %v565_v4 }
 0x13e   : > { %v517_v36 = vsel %vm495_vm3, %v490_v29, -inf  ;;  %v573_v38 = vsel %vm495_vm3, %v490_v29, 0.0  ;;  %v570_v11 = vadd.f32 %v569_v58, %v568_v40  ;;  %v543_v25 = vrot.slane %v542_v7, 1 }
 0x13f   : > { %v515_v32 = vrot.slane %v514_v26, 1  ;;  %v518_v42 = vrot.slane %v517_v36, 4  ;;  %v574_v46 = vrot.slane %v573_v38, 4  ;;  %v548_v13 = vrot.slane %v547_v59, 2 }
 0x140   : > { %v604_v21 = vrot.slane %v603_v5, 2  ;;  %v571_v28 = vrot.slane %v570_v11, 1  ;;  %v645_v40 = vunpack.c.l.b16 %v617_v24  ;;  %v544_v44 = vmax.f32 %v542_v7, %v543_v25 }
 0x141   : > { %v1234_v39 = vmax.f32 %v514_v26, %v515_v32  ;;  %v477_v43 = vpop.f32.mrf.mxu1  ;;  %v519_v53 = vmax.f32 %v517_v36, %v518_v42  ;;  %v575_v54 = vadd.f32 %v574_v46, %v573_v38  ;;  %v549_v29 = vmax.f32 %v547_v59, %v548_v13 }
 0x142   : > { %v478_v47 = vadd.f32 %v1202_v37, %v477_v43  ;;  %v605_v36 = vadd.f32 %v604_v21, %v603_v5  ;;  %v599_v45 = vrot.slane %v598_v16, 1  ;;  %v572_v46 = vadd.f32 %v571_v28, %v570_v11 }
 0x143   : > { %v772_v51 = vsel %vm654_vm5, %v1234_v39, %v771_v19  ;;  %v520_v60 = vrot.slane %v519_v53, 2  ;;  %v576_v0 = vrot.slane %v575_v54, 2  ;;  %v618_v35 = vpack.c.bf16 %v1234_v39, %v1234_v39 }
 0x144   : > { %v491_v55 = vmax.f32 %v478_v47, 0.0  ;;  %v550_v47 = vrot.slane %v549_v29, 1  ;;  %v791_v48 = vsel %vm652_vm4, %v609_v20, %v608_v56  ;;  %v606_v39 = vrot.slane %v605_v36, 1 }
 0x145   : > { %v521_v6 = vmax.f32 %v519_v53, %v520_v60  ;;  %v577_v17 = vadd.f32 %v576_v0, %v575_v54  ;;  %v646_v53 = vunpack.c.l.b16 %v618_v35  ;;  %v622_v60 = vpack.c.bf16 %v544_v44, %v544_v44  ;;  %v966_v35 = vld [vmem:[%s1331_s7 + $0x8] sm:$0xff] }
 0x146   : > { %v524_v61 = vsel %vm495_vm3, %v491_v55, -inf  ;;  %v580_v62 = vsel %vm495_vm3, %v491_v55, 0.0 }
 0x147   : > { %v525_v1 = vrot.slane %v524_v61, 4  ;;  %v581_v2 = vrot.slane %v580_v62, 4  ;;  %v522_v14 = vrot.slane %v521_v6, 1  ;;  %v578_v31 = vrot.slane %v577_v17, 1 }
 0x148   : > { %v650_v25 = vunpack.c.l.b16 %v622_v60 }
 0x149   : > { %v526_v8 = vmax.f32 %v524_v61, %v525_v1  ;;  %v582_v9 = vadd.f32 %v581_v2, %v580_v62  ;;  %v479_v10 = vpop.f32.mrf.mxu1  ;;  %v523_v22 = vmax.f32 %v521_v6, %v522_v14  ;;  %v579_v49 = vadd.f32 %v578_v31, %v577_v17 }
 0x14a   : > { %v480_v15 = vadd.f32 %v1202_v37, %v479_v10  ;;  %v610_v61 = vmul.f32 0.125, %v572_v46  ;;  %v551_v62 = vmax.f32 %v549_v29, %v550_v47  ;;  %v600_v2 = vadd.f32 %v599_v45, %v598_v16  ;;  %v1015_v45 = vld [vmem:[%s1332_s8] ss:$0 sm:$0xff] }
 0x14b   : > { %v527_v18 = vrot.slane %v526_v8, 2  ;;  %v583_v19 = vrot.slane %v582_v9, 2  ;;  %v773_v12 = vsel %vm656_vm6, %v523_v22, %v772_v51  ;;  %v653_v51 = vsel %vm652_vm4, %v645_v40, %v644_v3 }
 0x14c   : > { %v492_v23 = vmax.f32 %v480_v15, 0.0  ;;  %v619_v57 = vpack.c.bf16 %v523_v22, %v523_v22  ;;  %v611_v0 = vmul.f32 0.125, %v579_v49  ;;  %v655_v4 = vsel %vm654_vm5, %v646_v53, %v653_v51 }
 0x14d   : > { %v528_v26 = vmax.f32 %v526_v8, %v527_v18  ;;  %v584_v27 = vadd.f32 %v583_v19, %v582_v9  ;;  %v607_v6 = vadd.f32 %v606_v39, %v605_v36  ;;  %v623_v10 = vpack.c.bf16 %v551_v62, %v551_v62  ;;  %v965_v36 = vld [vmem:[%s1331_s7] sm:$0xff] }
 0x14e   : > { %v531_v30 = vsel %vm495_vm3, %v492_v23, -inf  ;;  %v587_v37 = vsel %vm495_vm3, %v492_v23, 0.0  ;;  %v647_v7 = vunpack.c.l.b16 %v619_v57  ;;  %v792_v11 = vsel %vm654_vm5, %v610_v61, %v791_v48 }
 0x14f   : > { %v529_v32 = vrot.slane %v528_v26, 1  ;;  %v532_v33 = vrot.slane %v531_v30, 4  ;;  %v588_v34 = vrot.slane %v587_v37, 4  ;;  %v585_v38 = vrot.slane %v584_v27, 1 }
 0x150   : > { %v793_v15 = vsel %vm656_vm6, %v611_v0, %v792_v11  ;;  %v614_v17 = vmul.f32 0.125, %v600_v2  ;;  %v615_v18 = vmul.f32 0.125, %v607_v6  ;;  %v657_v22 = vsel %vm656_vm6, %v647_v7, %v655_v4 }
 0x151   : > { %v530_v41 = vmax.f32 %v528_v26, %v529_v32  ;;  %v533_v42 = vmax.f32 %v531_v30, %v532_v33  ;;  %v589_v43 = vadd.f32 %v588_v34, %v587_v37  ;;  %v586_v54 = vadd.f32 %v585_v38, %v584_v27  ;;  %v968_v33 = vld [vmem:[%s1331_s7 + $0x18] sm:$0xff]  ;;  %v967_v34 = vld [vmem:[%s1331_s7 + $0x10] sm:$0xff]  ;;  %v1014_v38 = vld [vmem:[%s1330_s6] ss:$0 sm:$0xff] }
 0x152   : > { %v651_v28 = vunpack.c.l.b16 %v623_v10  ;;  %754 = vmatpush.bf16.msrb.mxu3 %v968_v33 }
 0x153   : > { %v534_v50 = vrot.slane %v533_v42, 2  ;;  %v590_v52 = vrot.slane %v589_v43, 2  ;;  %v774_v55 = vsel %vm658_vm7, %v530_v41, %v773_v12  ;;  %v620_v63 = vpack.c.bf16 %v530_v41, %v530_v41 }
 0x154   : > { %v612_v5 = vmul.f32 0.125, %v586_v54 }
 0x155   : > { %v535_v58 = vmax.f32 %v533_v42, %v534_v50  ;;  %v591_v59 = vadd.f32 %v590_v52, %v589_v43  ;;  %v648_v3 = vunpack.c.l.b16 %v620_v63 }
 0x156   : > { %v794_v19 = vsel %vm658_vm7, %v612_v5, %v793_v15  ;;  %755 = vmatpush.bf16.msrb.mxu3 %v967_v34 }
 0x157   : > { %v536_v1 = vrot.slane %v535_v58, 1  ;;  %v592_v56 = vrot.slane %v591_v59, 1  ;;  %v659_v26 = vsel %vm658_vm7, %v648_v3, %v657_v22 }
 0x159   : > { %v537_v8 = vmax.f32 %v535_v58, %v536_v1  ;;  %v593_v9 = vadd.f32 %v592_v56, %v591_v59 }
 0x15a   : > { %756 = vmatpush.bf16.msrb.mxu3 %v966_v35 }
 0x15b   : > { %v613_v13 = vmul.f32 0.125, %v593_v9  ;;  %v621_v14 = vpack.c.bf16 %v537_v8, %v537_v8  ;;  %v775_v16 = vsel %vm660_vm8, %v537_v8, %v774_v55 }
 0x15c   : > { %v776_v20 = vsel %vm662_vm9, %v544_v44, %v775_v16 }
 0x15d   : > { %v649_v21 = vunpack.c.l.b16 %v621_v14  ;;  %v795_v23 = vsel %vm660_vm8, %v613_v13, %v794_v19  ;;  %v777_v24 = vsel %vm664_vm10, %v551_v62, %v776_v20 }
 0x15e   : > { %v796_v27 = vsel %vm662_vm9, %v614_v17, %v795_v23  ;;  %757 = vmatpush.bf16.msrb.mxu3 %v965_v36 }
 0x15f   : > { %v661_v29 = vsel %vm660_vm8, %v649_v21, %v659_v26  ;;  %v797_v30 = vsel %vm664_vm10, %v615_v18, %v796_v27 }
 0x160   : > { %v663_v37 = vsel %vm662_vm9, %v650_v25, %v661_v29  ;;  %798 = vrot.lane.b32.xlu0 %v797_v30, %s1080_s17  ;;  %s1032_s17 = scalar_lea.hbm %s1031_s14, 8 }
 0x161   : > { %v665_v31 = vsel %vm664_vm10, %v651_v28, %v663_v37  ;;  %p1033_p11 = scmp.ne.s32.totalorder %s1031_s14, %s1032_s17  ;;  %p1038_p1 = scmp.lt.s32.totalorder %s1036_s22, %s1032_s17 }
 0x162   : > { %v666_v32 = vpack.c.b16 %v665_v31, %v665_v31 }
 0x163   : > { %p1034_p12 = pnand %p1033_p11, %p1166_p5  ;;  %p1039_p2 = por %p1038_p1, %p1037_p0 }
 0x164   : > { %933 = vmatmul.msk.bf16.vlgmr.msrb.gmra.mxu2 %vm495_vm3, %v666_v32 }
 0x165   : > { %p1035_p13 = pneg %p1034_p12 }
 0x167   : > { %p1040_p3 = pnand %p1039_p2, %p1035_p13 }
 0x1d2   : > { %v799_v50 = vpop.permute.xlu0 %798 }
 0x1e7   : > { %v703_v12 = vpop.f32.mrf.mxu2 }
 0x1e8   : > { %v704_v40 = vadd.f32 %v1014_v38, %v703_v12 }
 0x1ea   : > { %vm707_vm11 = vcmp.gt.f32.partialorder %v704_v40, 0.0  ;;  %v708_v41 = vmul.f32 0.2, %v704_v40 }
 0x1ec   : > { %v709_v42 = vsel %vm707_vm11, %v704_v40, %v708_v41 }
 0x1ed   : > { %v710_v43 = vpack.c.bf16 %v709_v42, %v709_v42 }
 0x1ef   : > { %v705_v44 = vpop.f32.mrf.mxu2  ;;  %950 = vmatmul.msk.bf16.vlgmr.msrb.gmra.mxu3 %vm495_vm3, %v710_v43 }
 0x272   : > { %v759_v46 = vpop.f32.mrf.mxu3 }
 0x273   : > { %v760_v47 = vadd.f32 %v1015_v45, %v759_v46 }
 0x275   : > { %v779_v48 = vadd.f32 %v777_v24, %v760_v47 }
 0x277   : > { %vm780_vm12 = vcmp.gt.f32.partialorder %v779_v48, 0.0  ;;  %v781_v49 = vmul.f32 0.2, %v779_v48 }
 0x279   : > { %v782_v52 = vsel %vm780_vm12, %v779_v48, %v781_v49 }
 0x27a   : > { %v761_v53 = vpop.f32.mrf.mxu3  ;;  %v801_v54 = vsel %vm495_vm3, %v782_v52, %v799_v50 }
 0x27b   : > { %802 = vst [vmem:[%s326_s27] sm:$0xff] %v801_v54 }
 0x27c   : > { %1043 = shalt.err (!%p1040_p3)
}
 0x27d   : > { %972 = dma.vmem_to_hbm [thread:$0]  (%p1166_p5), %s817_s28, 128, %s819_s29, %s804_s13  }
 0x27e PF: > { %p978_p4 = scmp.ge.s32.totalorder %s1078_s12, 2  ;;  %s830_s16 = sand.u32 1, %s1066_s30  }
 0x27f   : > { %s831_s26 = scalar_lea.sflag [#allocation3], %s830_s16 }
 0x280   : > { %p975_p7 = pnand %p978_p4, %p1170_p6 }
 0x282   : > { %p976_p8 = pneg %p975_p7 }
 0x284   : > { %1061 = dma.done.wait (%p976_p8), %s831_s26, 128  }
 0x285   : > { %1063 = vsyncadd (%p976_p8), %s831_s26, 4294967168  ;;  %p19_p9 = scmp.ge.s32.totalorder %s1154_s15, 6   ;;  %s1336_s30 = smov %s1070_s10 }
 0x286   : > { %s1337_s10 = smov %s1074_s11  ;;  %s1338_s11 = smov %s1164_s18 }
 0x287   : > { %s1339_s12 = smov %s1154_s15  ;;  %21 = sbr.rel (!%p19_p9) target bundleno = 3 (0x3), region = 91 }
 0x28c   :  { %837 = vsyncpa [#allocation3], 1 }
 0x28d   :  { %839 = vsyncpa [#allocation3 + $0x1], 1 }

// kernel: tpu_custom_call.1
= control target key start
LH: loop header
LB: loop body
LE: loop exit
PB: predicated region body
PF: predicated region fallthrough
CT: control target
= control target key end

     0   :  { %14 = vsyncpa [#allocation3], 0  ;;  %s1324_s0 = inlined_call_operand.vmem [shape: bf16[256,8], index: 0, kind: input, shape index: {}]   ;;  %s1325_s1 = inlined_call_operand.vmem [shape: bf16[8,32], index: 1, kind: input, shape index: {}]   ;;  %s1326_s2 = inlined_call_operand.vmem [shape: f32[1,32], index: 2, kind: input, shape index: {}]   ;;  %s1327_s3 = inlined_call_operand.vmem [shape: bf16[32,64], index: 3, kind: input, shape index: {}]   ;;  %s1328_s4 = inlined_call_operand.vmem [shape: f32[1,64], index: 4, kind: input, shape index: {}]   ;;  %s1329_s5 = inlined_call_operand.vmem [shape: bf16[64,64], index: 5, kind: input, shape index: {}]   ;;  %s1330_s6 = inlined_call_operand.vmem [shape: f32[1,64], index: 6, kind: input, shape index: {}]   ;;  %s1331_s7 = inlined_call_operand.vmem [shape: bf16[64,64], index: 7, kind: input, shape index: {}]   ;;  %s1332_s8 = inlined_call_operand.vmem [shape: f32[1,64], index: 8, kind: input, shape index: {}]   ;;  %s1333_s9 = inlined_call_operand.hbm [shape: f32[32,128], index: 9, kind: output, shape index: {}]  }
   0x1   :  { %16 = vsyncpa [#allocation3 + $0x1], 0  ;;  %s1131_s30 = smov 0   ;;  %s1133_s10 = smov 0  }
   0x2   :  { %s1135_s11 = smov 0   ;;  %s1137_s12 = smov 0  }
   0x3 LB: > { %s877_s13 = sadd.s32 4294967295, %s1078_s12   ;;  %s878_s14 = sadd.s32 4294967294, %s1078_s12   ;;  %s1078_s12 = sphi %s1137_s12, %s1339_s12   ;;  %s1074_s11 = sphi %s1135_s11, %s1338_s11   ;;  %s1070_s10 = sphi %s1133_s10, %s1337_s10   ;;  %s1066_s30 = sphi %s1131_s30, %s1336_s30  }
   0x4   : > { %s1154_s15 = sadd.s32 1, %s1078_s12   ;;  %s223_s16 = sadd.s32 1, %s1074_s11 }
   0x5   : > { %s220_s17 = ssub.s32 %s1078_s12, %s1154_s15  ;;  %p233_p0 = scmp.ne.s32.totalorder %s1074_s11, %s1070_s10 }
   0x6   : > { %p221_p1 = scmp.eq.s32.totalorder %s220_s17, 0  ;;  %p234_p2 = scmp.eq.s32.totalorder %s877_s13, 3 }
   0x7   : > { %p239_p3 = scmp.ne.s32.totalorder %s1070_s10, %s1066_s30  ;;  %p240_p4 = scmp.eq.s32.totalorder %s878_s14, 3 }
   0x8   : > { %s1164_s18 = scalar_select %p221_p1, %s1074_s11, %s223_s16  }
   0x9   : > { %p1166_p5 = por %p234_p2, %p233_p0  ;;  %p1170_p6 = por %p240_p4, %p239_p3 }
   0xa   : > { %p881_p7 = scmp.ge.s32.totalorder %s1078_s12, 1  ;;  %p291_p8 = scmp.lt.s32.totalorder %s1078_s12, 5 }
   0xc   : > { %p292_p9 = pnand %p881_p7, %p291_p8 }
   0xd   : > { %s1179_s23 = sshll.u32 (!%p292_p9), %s877_s13, 3  ;;  %s1080_s17 = smov (!%p292_p9), 64  }
   0xe   : > { %295 = sbr.rel (%p292_p9) target bundleno = 638 (0x27e), region = 56  ;;  %p328_p10 = scmp.lt.s32.totalorder (!%p292_p9), %s1179_s23, 31 }
   0xf   : > { %s324_s16 = sand.u32 (!%p292_p9), 1, %s1070_s10   ;;  %s814_s26 = scalar_lea.hbm (!%p292_p9), %s1333_s9, %s1179_s23 }
  0x10   : > { %s882_s22 = sshll.u32 (!%p292_p9), %s324_s16, 3  ;;  %s818_s29 = sshll.u32 (!%p292_p9), %s814_s26, 4  ;;  %s819_s29 = int_to_ptr.hbm [resolvable:$true] %s818_s29 }
  0x11   : > { %s326_s27 = scalar_lea.vmem (!%p292_p9), [#allocation2], %s882_s22  ;;  %s804_s13 = scalar_lea.sflag (!%p292_p9), [#allocation3], %s324_s16 }
  0x12   : > { %s1030_s14 = sshra.s32 (!%p292_p9), %s819_s29, 4  ;;  %s1036_s22 = scalar_lea.hbm (!%p292_p9), %s1333_s9, 32  ;;  %s1031_s14 = int_to_ptr.hbm [resolvable:$true] %s1030_s14 }
  0x13   : > { %v342_v0 = vld [vmem:[%s1325_s1] sm:$0xf]  ;;  %vm380_vm0 = vcmask 1043456   ;;  %s329_s24 = scalar_select %p328_p10, %s1179_s23, 31  ;;  %vm367_vm1 = vcmask 64512   ;;  %v960_v6 = vld [vmem:[%s1327_s3 + $0x8] sm:$0xff] }
  0x14   : > { %v382_v1 = vsel %vm380_vm0, %v342_v0, 0  ;;  %464 = vmatpush.bf16.msra.mxu1 %v960_v6  ;;  %970 = vmatpush.bf16.msra.mxu2 %v960_v6  ;;  %v959_v7 = vld [vmem:[%s1327_s3] sm:$0xff]  ;;  %vm445_vm2 = vcmask 261120   ;;  %vm495_vm3 = vcmask 523264   ;;  %vm652_vm4 = vcmask 1041409   ;;  %p1037_p0 = scmp.lt.s32.totalorder %s1031_s14, %s1333_s9 }
  0x15   : > { %391 = vmatpush.bf16.msra.mxu0 %v382_v1  ;;  %969 = vmatpush.bf16.msra.mxu3 %v382_v1  ;;  %s884_s25 = sshll.u32 %s329_s24, 2  ;;  %v1012_v9 = vld [vmem:[%s1326_s2] ss:$0 sm:$0xff]  ;;  %vm654_vm5 = vcmask 1042434   ;;  %vm656_vm6 = vcmask 1043459   ;;  %vm658_vm7 = vcmask 1044484  }
  0x16   : > { %s331_s28 = scalar_lea.vmem %s1324_s0, %s884_s25  ;;  %v1202_v37 = vld [vmem:[%s1328_s4] ss:$0 sm:$0xff]  ;;  %vm660_vm8 = vcmask 1045509   ;;  %vm662_vm9 = vcmask 1046534   ;;  %vm664_vm10 = vcmask 1047559  }
  0x17   : > { %v955_v2 = vld [vmem:[%s331_s28] sm:$0xff]  ;;  %v958_v3 = vld [vmem:[%s331_s28 + $0x18] sm:$0xff]  ;;  %v956_v4 = vld [vmem:[%s331_s28 + $0x8] sm:$0xff] }
  0x18   : > { %901 = vmatmul.msk.bf16.vlgmr.msra.gmra.mxu0 %vm367_vm1, %v955_v2  ;;  %904 = vmatmul.msk.bf16.vlgmr.msra.gmra.mxu3 %vm367_vm1, %v958_v3  ;;  %v957_v5 = vld [vmem:[%s331_s28 + $0x10] sm:$0xff]  ;;  %s816_s28 = sshll.u32 %s326_s27, 4  ;;  %s817_s28 = int_to_ptr.vmem [resolvable:$true] %s816_s28 }
  0x19   : > { %465 = vmatpush.bf16.msra.mxu1 %v959_v7  ;;  %971 = vmatpush.bf16.msra.mxu2 %v959_v7 }
  0x28   : > { %902 = vmatmul.msk.bf16.gmra.mxu0 %vm367_vm1, %v956_v4 }
  0x38   : > { %903 = vmatmul.msk.bf16.gmra.mxu0 %vm367_vm1, %v957_v5 }
  0x95   : > { %v393_v8 = vpop.f32.mrf.mxu0 }
  0x96   : > { %v394_v11 = vadd.f32 %v1012_v9, %v393_v8  ;;  %v964_v8 = vld [vmem:[%s1329_s5 + $0x18] sm:$0xff] }
  0x97   : > { %698 = vmatpush.bf16.msrb.mxu2 %v964_v8 }
  0x98   : > { %v413_v14 = vmax.f32 %v394_v11, 0.0 }
  0x9b   : > { %v408_v10 = vpop.f32.mrf.mxu3 }
  0x9c   : > { %v409_v15 = vadd.f32 %v1012_v9, %v408_v10 }
  0x9d   : > { %v395_v12 = vpop.f32.mrf.mxu0 }
  0x9e   : > { %v396_v13 = vadd.f32 %v1012_v9, %v395_v12  ;;  %v419_v19 = vmax.f32 %v409_v15, 0.0 }
  0xa0   : > { %v414_v16 = vmax.f32 %v396_v13, 0.0 }
  0xa2   : > { %v426_v17 = vpack.c.bf16 %v414_v16, %v413_v14 }
  0xa3   : > { %v410_v18 = vpop.f32.mrf.mxu3 }
  0xa4   : > { %v411_v20 = vadd.f32 %v1012_v9, %v410_v18  ;;  %913 = vmatmul.msk.bf16.vlgmr.msra.gmra.mxu1 %vm445_vm2, %v426_v17 }
  0xa5   : > { %v398_v21 = vpop.f32.mrf.mxu0 }
  0xa6   : > { %v420_v22 = vmax.f32 %v411_v20, 0.0  ;;  %v399_v24 = vadd.f32 %v1012_v9, %v398_v21 }
  0xa8   : > { %v429_v23 = vpack.c.bf16 %v420_v22, %v419_v19  ;;  %v415_v27 = vmax.f32 %v399_v24, 0.0  ;;  %v963_v22 = vld [vmem:[%s1329_s5 + $0x10] sm:$0xff] }
  0xa9   : > { %699 = vmatpush.bf16.msrb.mxu2 %v963_v22 }
  0xaa   : > { %916 = vmatmul.msk.bf16.vlgmr.msra.gmra.mxu2 %vm445_vm2, %v429_v23 }
  0xad   : > { %v400_v25 = vpop.f32.mrf.mxu0 }
  0xae   : > { %v401_v26 = vadd.f32 %v1012_v9, %v400_v25 }
  0xb0   : > { %v416_v28 = vmax.f32 %v401_v26, 0.0 }
  0xb2   : > { %v427_v29 = vpack.c.bf16 %v416_v28, %v415_v27  ;;  %v962_v28 = vld [vmem:[%s1329_s5 + $0x8] sm:$0xff] }
  0xb3   : > { %700 = vmatpush.bf16.msrb.mxu2 %v962_v28 }
  0xb4   : > { %914 = vmatmul.msk.bf16.gmra.mxu1 %vm445_vm2, %v427_v29 }
  0xb5   : > { %v403_v30 = vpop.f32.mrf.mxu0 }
  0xb6   : > { %v404_v31 = vadd.f32 %v1012_v9, %v403_v30 }
  0xb8   : > { %v417_v34 = vmax.f32 %v404_v31, 0.0 }
  0xbd   : > { %v405_v32 = vpop.f32.mrf.mxu0 }
  0xbe   : > { %v406_v33 = vadd.f32 %v1012_v9, %v405_v32 }
  0xc0   : > { %v418_v35 = vmax.f32 %v406_v33, 0.0 }
  0xc2   : > { %v428_v36 = vpack.c.bf16 %v418_v35, %v417_v34 }
  0xc4   : > { %915 = vmatmul.msk.bf16.gmra.mxu1 %vm445_vm2, %v428_v36 }
 0x121   : > { %v467_v38 = vpop.f32.mrf.mxu1 }
 0x122   : > { %v468_v39 = vadd.f32 %v1202_v37, %v467_v38 }
 0x124   : > { %v487_v40 = vmax.f32 %v468_v39, 0.0 }
 0x126   : > { %v496_v41 = vsel %vm495_vm3, %v487_v40, -inf  ;;  %v552_v44 = vsel %vm495_vm3, %v487_v40, 0.0 }
 0x127   : > { %v497_v42 = vrot.slane %v496_v41, 4  ;;  %v553_v47 = vrot.slane %v552_v44, 4 }
 0x129   : > { %v498_v43 = vmax.f32 %v496_v41, %v497_v42  ;;  %v469_v45 = vpop.f32.mrf.mxu1  ;;  %v554_v53 = vadd.f32 %v553_v47, %v552_v44  ;;  %v961_v44 = vld [vmem:[%s1329_s5] sm:$0xff] }
 0x12a   : > { %v470_v46 = vadd.f32 %v1202_v37, %v469_v45  ;;  %701 = vmatpush.bf16.msrb.mxu2 %v961_v44 }
 0x12b   : > { %v499_v49 = vrot.slane %v498_v43, 2  ;;  %v555_v62 = vrot.slane %v554_v53, 2 }
 0x12c   : > { %v488_v48 = vmax.f32 %v470_v46, 0.0 }
 0x12d   : > { %v482_v50 = vpop.f32.mrf.mxu2  ;;  %v500_v55 = vmax.f32 %v498_v43, %v499_v49  ;;  %v556_v9 = vadd.f32 %v555_v62, %v554_v53 }
 0x12e   : > { %v503_v51 = vsel %vm495_vm3, %v488_v48, -inf  ;;  %v559_v54 = vsel %vm495_vm3, %v488_v48, 0.0  ;;  %v483_v57 = vadd.f32 %v1202_v37, %v482_v50 }
 0x12f   : > { %v504_v52 = vrot.slane %v503_v51, 4  ;;  %v560_v61 = vrot.slane %v559_v54, 4  ;;  %v501_v0 = vrot.slane %v500_v55, 1  ;;  %v557_v23 = vrot.slane %v556_v9, 1 }
 0x130   : > { %v493_v2 = vmax.f32 %v483_v57, 0.0 }
 0x131   : > { %v505_v56 = vmax.f32 %v503_v51, %v504_v52  ;;  %v472_v58 = vpop.f32.mrf.mxu1  ;;  %v561_v6 = vadd.f32 %v560_v61, %v559_v54  ;;  %v502_v11 = vmax.f32 %v500_v55, %v501_v0  ;;  %v558_v34 = vadd.f32 %v557_v23, %v556_v9 }
 0x132   : > { %v473_v59 = vadd.f32 %v1202_v37, %v472_v58  ;;  %v538_v13 = vsel %vm495_vm3, %v493_v2, -inf  ;;  %v594_v25 = vsel %vm495_vm3, %v493_v2, 0.0 }
 0x133   : > { %v506_v60 = vrot.slane %v505_v56, 2  ;;  %v562_v18 = vrot.slane %v561_v6, 2  ;;  %v539_v24 = vrot.slane %v538_v13, 4  ;;  %v595_v31 = vrot.slane %v594_v25, 4 }
 0x134   : > { %v489_v63 = vmax.f32 %v473_v59, 0.0  ;;  %v616_v48 = vpack.c.bf16 %v502_v11, %v502_v11 }
 0x135   : > { %v507_v1 = vmax.f32 %v505_v56, %v506_v60  ;;  %v484_v3 = vpop.f32.mrf.mxu2  ;;  %v563_v30 = vadd.f32 %v562_v18, %v561_v6  ;;  %v540_v35 = vmax.f32 %v538_v13, %v539_v24  ;;  %v596_v50 = vadd.f32 %v595_v31, %v594_v25 }
 0x136   : > { %v510_v4 = vsel %vm495_vm3, %v489_v63, -inf  ;;  %v485_v10 = vadd.f32 %v1202_v37, %v484_v3  ;;  %v566_v16 = vsel %vm495_vm3, %v489_v63, 0.0  ;;  %v608_v56 = vmul.f32 0.125, %v558_v34 }
 0x137   : > { %v508_v5 = vrot.slane %v507_v1, 1  ;;  %v511_v7 = vrot.slane %v510_v4, 4  ;;  %v567_v27 = vrot.slane %v566_v16, 4  ;;  %v564_v49 = vrot.slane %v563_v30, 1 }
 0x138   : > { %v494_v21 = vmax.f32 %v485_v10, 0.0  ;;  %v541_v57 = vrot.slane %v540_v35, 2  ;;  %v597_v63 = vrot.slane %v596_v50, 2  ;;  %v644_v3 = vunpack.c.l.b16 %v616_v48 }
 0x139   : > { %v1217_v12 = vmax.f32 %v507_v1, %v508_v5  ;;  %v512_v14 = vmax.f32 %v510_v4, %v511_v7  ;;  %v474_v15 = vpop.f32.mrf.mxu1  ;;  %v568_v40 = vadd.f32 %v567_v27, %v566_v16  ;;  %v565_v4 = vadd.f32 %v564_v49, %v563_v30 }
 0x13a   : > { %v475_v17 = vadd.f32 %v1202_v37, %v474_v15  ;;  %v545_v33 = vsel %vm495_vm3, %v494_v21, -inf  ;;  %v601_v41 = vsel %vm495_vm3, %v494_v21, 0.0  ;;  %v542_v7 = vmax.f32 %v540_v35, %v541_v57 }
 0x13b   : > { %v771_v19 = vsel %vm652_vm4, %v1217_v12, %v502_v11  ;;  %v513_v20 = vrot.slane %v512_v14, 2  ;;  %v546_v45 = vrot.slane %v545_v33, 4  ;;  %v602_v52 = vrot.slane %v601_v41, 4 }
 0x13c   : > { %v490_v29 = vmax.f32 %v475_v17, 0.0  ;;  %v569_v58 = vrot.slane %v568_v40, 2  ;;  %v598_v16 = vadd.f32 %v597_v63, %v596_v50  ;;  %v617_v24 = vpack.c.bf16 %v1217_v12, %v1217_v12 }
 0x13d   : > { %v514_v26 = vmax.f32 %v512_v14, %v513_v20  ;;  %v547_v59 = vmax.f32 %v545_v33, %v546_v45  ;;  %v603_v5 = vadd.f32 %v602_v52, %v601_v41  ;;  %v609_v20 = vmul.f32 0.125, %v565_v4 }
 0x13e   : > { %v517_v36 = vsel %vm495_vm3, %v490_v29, -inf  ;;  %v573_v38 = vsel %vm495_vm3, %v490_v29, 0.0  ;;  %v570_v11 = vadd.f32 %v569_v58, %v568_v40  ;;  %v543_v25 = vrot.slane %v542_v7, 1 }
 0x13f   : > { %v515_v32 = vrot.slane %v514_v26, 1  ;;  %v518_v42 = vrot.slane %v517_v36, 4  ;;  %v574_v46 = vrot.slane %v573_v38, 4  ;;  %v548_v13 = vrot.slane %v547_v59, 2 }
 0x140   : > { %v604_v21 = vrot.slane %v603_v5, 2  ;;  %v571_v28 = vrot.slane %v570_v11, 1  ;;  %v645_v40 = vunpack.c.l.b16 %v617_v24  ;;  %v544_v44 = vmax.f32 %v542_v7, %v543_v25 }
 0x141   : > { %v1234_v39 = vmax.f32 %v514_v26, %v515_v32  ;;  %v477_v43 = vpop.f32.mrf.mxu1  ;;  %v519_v53 = vmax.f32 %v517_v36, %v518_v42  ;;  %v575_v54 = vadd.f32 %v574_v46, %v573_v38  ;;  %v549_v29 = vmax.f32 %v547_v59, %v548_v13 }
 0x142   : > { %v478_v47 = vadd.f32 %v1202_v37, %v477_v43  ;;  %v605_v36 = vadd.f32 %v604_v21, %v603_v5  ;;  %v599_v45 = vrot.slane %v598_v16, 1  ;;  %v572_v46 = vadd.f32 %v571_v28, %v570_v11 }
 0x143   : > { %v772_v51 = vsel %vm654_vm5, %v1234_v39, %v771_v19  ;;  %v520_v60 = vrot.slane %v519_v53, 2  ;;  %v576_v0 = vrot.slane %v575_v54, 2  ;;  %v618_v35 = vpack.c.bf16 %v1234_v39, %v1234_v39 }
 0x144   : > { %v491_v55 = vmax.f32 %v478_v47, 0.0  ;;  %v550_v47 = vrot.slane %v549_v29, 1  ;;  %v791_v48 = vsel %vm652_vm4, %v609_v20, %v608_v56  ;;  %v606_v39 = vrot.slane %v605_v36, 1 }
 0x145   : > { %v521_v6 = vmax.f32 %v519_v53, %v520_v60  ;;  %v577_v17 = vadd.f32 %v576_v0, %v575_v54  ;;  %v646_v53 = vunpack.c.l.b16 %v618_v35  ;;  %v622_v60 = vpack.c.bf16 %v544_v44, %v544_v44  ;;  %v966_v35 = vld [vmem:[%s1331_s7 + $0x8] sm:$0xff] }
 0x146   : > { %v524_v61 = vsel %vm495_vm3, %v491_v55, -inf  ;;  %v580_v62 = vsel %vm495_vm3, %v491_v55, 0.0 }
 0x147   : > { %v525_v1 = vrot.slane %v524_v61, 4  ;;  %v581_v2 = vrot.slane %v580_v62, 4  ;;  %v522_v14 = vrot.slane %v521_v6, 1  ;;  %v578_v31 = vrot.slane %v577_v17, 1 }
 0x148   : > { %v650_v25 = vunpack.c.l.b16 %v622_v60 }
 0x149   : > { %v526_v8 = vmax.f32 %v524_v61, %v525_v1  ;;  %v582_v9 = vadd.f32 %v581_v2, %v580_v62  ;;  %v479_v10 = vpop.f32.mrf.mxu1  ;;  %v523_v22 = vmax.f32 %v521_v6, %v522_v14  ;;  %v579_v49 = vadd.f32 %v578_v31, %v577_v17 }
 0x14a   : > { %v480_v15 = vadd.f32 %v1202_v37, %v479_v10  ;;  %v610_v61 = vmul.f32 0.125, %v572_v46  ;;  %v551_v62 = vmax.f32 %v549_v29, %v550_v47  ;;  %v600_v2 = vadd.f32 %v599_v45, %v598_v16  ;;  %v1015_v45 = vld [vmem:[%s1332_s8] ss:$0 sm:$0xff] }
 0x14b   : > { %v527_v18 = vrot.slane %v526_v8, 2  ;;  %v583_v19 = vrot.slane %v582_v9, 2  ;;  %v773_v12 = vsel %vm656_vm6, %v523_v22, %v772_v51  ;;  %v653_v51 = vsel %vm652_vm4, %v645_v40, %v644_v3 }
 0x14c   : > { %v492_v23 = vmax.f32 %v480_v15, 0.0  ;;  %v619_v57 = vpack.c.bf16 %v523_v22, %v523_v22  ;;  %v611_v0 = vmul.f32 0.125, %v579_v49  ;;  %v655_v4 = vsel %vm654_vm5, %v646_v53, %v653_v51 }
 0x14d   : > { %v528_v26 = vmax.f32 %v526_v8, %v527_v18  ;;  %v584_v27 = vadd.f32 %v583_v19, %v582_v9  ;;  %v607_v6 = vadd.f32 %v606_v39, %v605_v36  ;;  %v623_v10 = vpack.c.bf16 %v551_v62, %v551_v62  ;;  %v965_v36 = vld [vmem:[%s1331_s7] sm:$0xff] }
 0x14e   : > { %v531_v30 = vsel %vm495_vm3, %v492_v23, -inf  ;;  %v587_v37 = vsel %vm495_vm3, %v492_v23, 0.0  ;;  %v647_v7 = vunpack.c.l.b16 %v619_v57  ;;  %v792_v11 = vsel %vm654_vm5, %v610_v61, %v791_v48 }
 0x14f   : > { %v529_v32 = vrot.slane %v528_v26, 1  ;;  %v532_v33 = vrot.slane %v531_v30, 4  ;;  %v588_v34 = vrot.slane %v587_v37, 4  ;;  %v585_v38 = vrot.slane %v584_v27, 1 }
 0x150   : > { %v793_v15 = vsel %vm656_vm6, %v611_v0, %v792_v11  ;;  %v614_v17 = vmul.f32 0.125, %v600_v2  ;;  %v615_v18 = vmul.f32 0.125, %v607_v6  ;;  %v657_v22 = vsel %vm656_vm6, %v647_v7, %v655_v4 }
 0x151   : > { %v530_v41 = vmax.f32 %v528_v26, %v529_v32  ;;  %v533_v42 = vmax.f32 %v531_v30, %v532_v33  ;;  %v589_v43 = vadd.f32 %v588_v34, %v587_v37  ;;  %v586_v54 = vadd.f32 %v585_v38, %v584_v27  ;;  %v968_v33 = vld [vmem:[%s1331_s7 + $0x18] sm:$0xff]  ;;  %v967_v34 = vld [vmem:[%s1331_s7 + $0x10] sm:$0xff]  ;;  %v1014_v38 = vld [vmem:[%s1330_s6] ss:$0 sm:$0xff] }
 0x152   : > { %v651_v28 = vunpack.c.l.b16 %v623_v10  ;;  %754 = vmatpush.bf16.msrb.mxu3 %v968_v33 }
 0x153   : > { %v534_v50 = vrot.slane %v533_v42, 2  ;;  %v590_v52 = vrot.slane %v589_v43, 2  ;;  %v774_v55 = vsel %vm658_vm7, %v530_v41, %v773_v12  ;;  %v620_v63 = vpack.c.bf16 %v530_v41, %v530_v41 }
 0x154   : > { %v612_v5 = vmul.f32 0.125, %v586_v54 }
 0x155   : > { %v535_v58 = vmax.f32 %v533_v42, %v534_v50  ;;  %v591_v59 = vadd.f32 %v590_v52, %v589_v43  ;;  %v648_v3 = vunpack.c.l.b16 %v620_v63 }
 0x156   : > { %v794_v19 = vsel %vm658_vm7, %v612_v5, %v793_v15  ;;  %755 = vmatpush.bf16.msrb.mxu3 %v967_v34 }
 0x157   : > { %v536_v1 = vrot.slane %v535_v58, 1  ;;  %v592_v56 = vrot.slane %v591_v59, 1  ;;  %v659_v26 = vsel %vm658_vm7, %v648_v3, %v657_v22 }
 0x159   : > { %v537_v8 = vmax.f32 %v535_v58, %v536_v1  ;;  %v593_v9 = vadd.f32 %v592_v56, %v591_v59 }
 0x15a   : > { %756 = vmatpush.bf16.msrb.mxu3 %v966_v35 }
 0x15b   : > { %v613_v13 = vmul.f32 0.125, %v593_v9  ;;  %v621_v14 = vpack.c.bf16 %v537_v8, %v537_v8  ;;  %v775_v16 = vsel %vm660_vm8, %v537_v8, %v774_v55 }
 0x15c   : > { %v776_v20 = vsel %vm662_vm9, %v544_v44, %v775_v16 }
 0x15d   : > { %v649_v21 = vunpack.c.l.b16 %v621_v14  ;;  %v795_v23 = vsel %vm660_vm8, %v613_v13, %v794_v19  ;;  %v777_v24 = vsel %vm664_vm10, %v551_v62, %v776_v20 }
 0x15e   : > { %v796_v27 = vsel %vm662_vm9, %v614_v17, %v795_v23  ;;  %757 = vmatpush.bf16.msrb.mxu3 %v965_v36 }
 0x15f   : > { %v661_v29 = vsel %vm660_vm8, %v649_v21, %v659_v26  ;;  %v797_v30 = vsel %vm664_vm10, %v615_v18, %v796_v27 }
 0x160   : > { %v663_v37 = vsel %vm662_vm9, %v650_v25, %v661_v29  ;;  %798 = vrot.lane.b32.xlu0 %v797_v30, %s1080_s17  ;;  %s1032_s17 = scalar_lea.hbm %s1031_s14, 8 }
 0x161   : > { %v665_v31 = vsel %vm664_vm10, %v651_v28, %v663_v37  ;;  %p1033_p11 = scmp.ne.s32.totalorder %s1031_s14, %s1032_s17  ;;  %p1038_p1 = scmp.lt.s32.totalorder %s1036_s22, %s1032_s17 }
 0x162   : > { %v666_v32 = vpack.c.b16 %v665_v31, %v665_v31 }
 0x163   : > { %p1034_p12 = pnand %p1033_p11, %p1166_p5  ;;  %p1039_p2 = por %p1038_p1, %p1037_p0 }
 0x164   : > { %933 = vmatmul.msk.bf16.vlgmr.msrb.gmra.mxu2 %vm495_vm3, %v666_v32 }
 0x165   : > { %p1035_p13 = pneg %p1034_p12 }
 0x167   : > { %p1040_p3 = pnand %p1039_p2, %p1035_p13 }
 0x1d2   : > { %v799_v50 = vpop.permute.xlu0 %798 }
 0x1e7   : > { %v703_v12 = vpop.f32.mrf.mxu2 }
 0x1e8   : > { %v704_v40 = vadd.f32 %v1014_v38, %v703_v12 }
 0x1ea   : > { %vm707_vm11 = vcmp.gt.f32.partialorder %v704_v40, 0.0  ;;  %v708_v41 = vmul.f32 0.2, %v704_v40 }
 0x1ec   : > { %v709_v42 = vsel %vm707_vm11, %v704_v40, %v708_v41 }
 0x1ed   : > { %v710_v43 = vpack.c.bf16 %v709_v42, %v709_v42 }
 0x1ef   : > { %v705_v44 = vpop.f32.mrf.mxu2  ;;  %950 = vmatmul.msk.bf16.vlgmr.msrb.gmra.mxu3 %vm495_vm3, %v710_v43 }
 0x272   : > { %v759_v46 = vpop.f32.mrf.mxu3 }
 0x273   : > { %v760_v47 = vadd.f32 %v1015_v45, %v759_v46 }
 0x275   : > { %v779_v48 = vadd.f32 %v777_v24, %v760_v47 }
 0x277   : > { %vm780_vm12 = vcmp.gt.f32.partialorder %v779_v48, 0.0  ;;  %v781_v49 = vmul.f32 0.2, %v779_v48 }
 0x279   : > { %v782_v52 = vsel %vm780_vm12, %v779_v48, %v781_v49 }
 0x27a   : > { %v761_v53 = vpop.f32.mrf.mxu3  ;;  %v801_v54 = vsel %vm495_vm3, %v782_v52, %v799_v50 }
 0x27b   : > { %802 = vst [vmem:[%s326_s27] sm:$0xff] %v801_v54 }
 0x27c   : > { %1043 = shalt.err (!%p1040_p3)
}
 0x27d   : > { %972 = dma.vmem_to_hbm [thread:$0]  (%p1166_p5), %s817_s28, 128, %s819_s29, %s804_s13  }
 0x27e PF: > { %p978_p4 = scmp.ge.s32.totalorder %s1078_s12, 2  ;;  %s830_s16 = sand.u32 1, %s1066_s30  }
 0x27f   : > { %s831_s26 = scalar_lea.sflag [#allocation3], %s830_s16 }
 0x280   : > { %p975_p7 = pnand %p978_p4, %p1170_p6 }
 0x282   : > { %p976_p8 = pneg %p975_p7 }
 0x284   : > { %1061 = dma.done.wait (%p976_p8), %s831_s26, 128  }
 0x285   : > { %1063 = vsyncadd (%p976_p8), %s831_s26, 4294967168  ;;  %p19_p9 = scmp.ge.s32.totalorder %s1154_s15, 6   ;;  %s1336_s30 = smov %s1070_s10 }
 0x286   : > { %s1337_s10 = smov %s1074_s11  ;;  %s1338_s11 = smov %s1164_s18 }
 0x287   : > { %s1339_s12 = smov %s1154_s15  ;;  %21 = sbr.rel (!%p19_p9) target bundleno = 3 (0x3), region = 91 }
 0x28c   :  { %837 = vsyncpa [#allocation3], 1 }
 0x28d   :  { %839 = vsyncpa [#allocation3 + $0x1], 1 }

</bundles_post_ra>
